<compile_context>
chip_gen: v7x
topology: tpu7x:2x2x1
jax: 0.10.0
libtpu: 0.0.40
codegen_flags: <defaults>
</compile_context>

<pallas_src>
import numpy as np
import jax
import jax.numpy as jnp
from jax import lax
from jax.experimental import pallas as pl
from jax.experimental.pallas import tpu as pltpu

LANES = 128           # lane width (fast axis)
MAX_BLOCK_ROWS = 512  # rows per grid step; (512,128) f32 = 256 KiB per buffer


def _ps_kernel(n_ref, base_ref, mid_ref, ddec_ref, dspk_ref,
               x_ref, out_ref, spk_ref):
    i = pl.program_id(0)
    last = pl.num_programs(0) - 1

    x = x_ref[...].astype(jnp.float32)              # (block_rows, 128)
    nbins = mid_ref.shape[0]                        # static: numh - 1

    out_acc = jnp.full(x.shape, base_ref[0], jnp.float32)
    spk_acc = jnp.full(x.shape, base_ref[1], jnp.float32)

    # Statically unrolled cumulative-delta table decode (SMEM scalar operands).
    for j in range(nbins):
        m = x >= mid_ref[j]
        out_acc = out_acc + jnp.where(m, ddec_ref[j], 0.0)
        spk_acc = spk_acc + jnp.where(m, dspk_ref[j], 0.0)

    out_ref[...] = out_acc.astype(out_ref.dtype)

    # Lane-dense per-block spike partial sum; padding mask only on last block.
    @pl.when(i != last)
    def _():
        spk_ref[...] = jnp.sum(spk_acc, axis=0, keepdims=True)

    @pl.when(i == last)
    def _():
        row = lax.broadcasted_iota(jnp.int32, x.shape, 0)
        col = lax.broadcasted_iota(jnp.int32, x.shape, 1)
        lin = (i * x.shape[0] + row) * x.shape[1] + col
        valid = lin < n_ref[0]
        spk_ref[...] = jnp.sum(jnp.where(valid, spk_acc, 0.0),
                               axis=0, keepdims=True)


def ps_activation(x, grid_h, decode_tbl, spike_tbl, *,
                  max_block_rows=MAX_BLOCK_ROWS):
    """Pallas PS activation. Returns (out with x's shape/dtype, total spike count)."""
    orig_shape = x.shape
    orig_dtype = x.dtype
    n = x.size

    flat = x.reshape(-1)                            # keep native dtype (no cast pass)
    rows = pl.cdiv(n, LANES)
    n_pad = rows * LANES
    if n_pad != n:                                  # pad only when truly ragged
        flat = jnp.pad(flat, (0, n_pad - n))
    x2d = flat.reshape(rows, LANES)

    block_rows = rows if rows <= max_block_rows else max_block_rows
    num_blocks = pl.cdiv(rows, block_rows)
    # NOTE: if block_rows does not divide rows, Pallas pads the last block
    # (OOB reads are unspecified, OOB writes dropped); the n_ref mask keeps the
    # spike count correct and the wrapper slice keeps the output correct.

    # Tiny per-bin tables (SMEM): midpoints and value / spike-count deltas.
    g = grid_h.astype(jnp.float32)
    dec = decode_tbl.astype(jnp.float32)
    spk = spike_tbl.astype(jnp.float32)
    mids = 0.5 * (g[1:] + g[:-1])
    ddec = dec[1:] - dec[:-1]
    dspk = spk[1:] - spk[:-1]
    base = jnp.stack([dec[0], spk[0]])

    out2d, spikes_part = pl.pallas_call(
        _ps_kernel,
        out_shape=(
            jax.ShapeDtypeStruct((rows, LANES), orig_dtype),
            jax.ShapeDtypeStruct((num_blocks, LANES), jnp.float32),
        ),
        grid=(num_blocks,),
        in_specs=[
            pl.BlockSpec(memory_space=pltpu.MemorySpace.SMEM),    # n_valid
            pl.BlockSpec(memory_space=pltpu.MemorySpace.SMEM),    # [dec0, spk0]
            pl.BlockSpec(memory_space=pltpu.MemorySpace.SMEM),    # bin midpoints
            pl.BlockSpec(memory_space=pltpu.MemorySpace.SMEM),    # decode deltas
            pl.BlockSpec(memory_space=pltpu.MemorySpace.SMEM),    # spike deltas
            pl.BlockSpec((block_rows, LANES), lambda i: (i, 0)),  # x tile
        ],
        out_specs=(
            pl.BlockSpec((block_rows, LANES), lambda i: (i, 0)),  # out tile
            pl.BlockSpec((1, LANES), lambda i: (i, 0)),           # spike partials
        ),
        compiler_params=pltpu.CompilerParams(
            dimension_semantics=("parallel",)),
    )(jnp.array([n], jnp.int32), base, mids, ddec, dspk, x2d)

    out = out2d.reshape(-1)[:n].reshape(orig_shape)
    spikes = jnp.sum(spikes_part)
    return out, spikes


# ------------------------- synthetic hdT table -------------------------------

def build_ps_tables(activation=jax.nn.gelu, numh=33, K=4, l=-4.0, r=4.0):
    """Deterministic synthetic PS table: h[:,0]=grid, d in {0,1}^(numh,K), T, b."""
    grid_h = np.linspace(l, r, numh, dtype=np.float32)
    target = np.asarray(activation(jnp.asarray(grid_h)), dtype=np.float32)
    T = np.array([2.0 ** (-k) for k in range(K)], dtype=np.float32)
    b = float(target.min())
    d = np.zeros((numh, K), dtype=np.float32)
    resid = target - b
    for k in range(K):                      # greedy binary spike decomposition
        fire = (resid >= T[k]).astype(np.float32)
        d[:, k] = fire
        resid = resid - fire * T[k]
    decode = d @ T + b                      # per-bin decoded output value
    spikes = d.sum(axis=1)                  # per-bin spike count
    return (jnp.asarray(grid_h), jnp.asarray(d), jnp.asarray(T), b,
            jnp.asarray(decode), jnp.asarray(spikes))


# ------------------------- plain-JAX reference --------------------------------

def ps_activation_ref(x, grid_h, decode_tbl, spike_tbl):
    """Same semantics as the torch module:
         idx = clamp(searchsorted(h, x), 1, numh-1)
         nearest_idx = idx-1 if |x-h[idx-1]| < |x-h[idx]| else idx   (ties right)
       For a sorted grid this is exactly nearest_idx = #{j : x >= (h[j]+h[j+1])/2}.
    """
    sp = x.shape
    xf = x.reshape(-1).astype(jnp.float32)
    g = grid_h.astype(jnp.float32)
    mids = 0.5 * (g[1:] + g[:-1])
    nidx = jnp.searchsorted(mids, xf, side='right')
    out = decode_tbl[nidx].reshape(sp).astype(x.dtype)
    spikes = spike_tbl[nidx].sum()
    return out, spikes


if __name__ == "__main__":
    grid_h, d, T, b, decode_tbl, spike_tbl = build_ps_tables(
        activation=jax.nn.gelu, numh=33, K=4, l=-4.0, r=4.0)

    shapes = [
        (2, 4, 16, 16),     # 2048 elems: single block, lane-aligned
        (3, 5, 7, 11),      # 1155 elems: lane padding + masked tail
        (2, 4, 128, 128),   # 131072 elems: multi-block parallel grid
    ]
    key = jax.random.PRNGKey(0)
    for sp in shapes:
        key, sub = jax.random.split(key)
        x = jax.random.normal(sub, sp, dtype=jnp.float32) * 2.0

        out, spikes = ps_activation(x, grid_h, decode_tbl, spike_tbl)
        out = jax.block_until_ready(out)
        spikes = jax.block_until_ready(spikes)

        out_ref, spikes_ref = ps_activation_ref(x, grid_h, decode_tbl, spike_tbl)

        assert out.shape == x.shape and out.dtype == x.dtype
        assert np.allclose(np.asarray(out), np.asarray(out_ref), atol=1e-5), \
            f"out mismatch for shape {sp}"
        assert abs(float(spikes) - float(spikes_ref)) <= 1e-3, \
            f"spike count mismatch for shape {sp}"

    print("KERNEL_OK")
</pallas_src>

<mosaic_0001>
module attributes {stable_mosaic.version = 11 : i64} {
  func.func @_ps_kernel(%arg0: i32, %arg1: memref<1xi32, #tpu.memory_space<smem>>, %arg2: memref<2xf32, #tpu.memory_space<smem>>, %arg3: memref<32xf32, #tpu.memory_space<smem>>, %arg4: memref<32xf32, #tpu.memory_space<smem>>, %arg5: memref<32xf32, #tpu.memory_space<smem>>, %arg6: memref<16x128xf32, #tpu.memory_space<vmem>>, %arg7: memref<16x128xf32, #tpu.memory_space<vmem>>, %arg8: memref<1x128xf32, #tpu.memory_space<vmem>>) attributes {dimension_semantics = [#tpu.dimension_semantics<parallel>], iteration_bounds = array<i64: 1>, scalar_prefetch = 0 : i64, scratch_operands = 0 : i64, tpu.core_type = #tpu.core_type<tc>, window_params = [{transform_indices = @transform_0, window_bounds = array<i64: 1>}, {transform_indices = @transform_1, window_bounds = array<i64: 2>}, {transform_indices = @transform_2, window_bounds = array<i64: 32>}, {transform_indices = @transform_3, window_bounds = array<i64: 32>}, {transform_indices = @transform_4, window_bounds = array<i64: 32>}, {transform_indices = @transform_5, window_bounds = array<i64: 16, 128>}, {transform_indices = @transform_6, window_bounds = array<i64: 16, 128>}, {transform_indices = @transform_7, window_bounds = array<i64: 1, 128>}]} {
    %c0 = arith.constant 0 : index
    %c0_0 = arith.constant 0 : index
    %0 = vector.load %arg6[%c0, %c0_0] : memref<16x128xf32, #tpu.memory_space<vmem>>, vector<16x128xf32>
    %c0_1 = arith.constant 0 : index
    %1 = memref.load %arg2[%c0_1] : memref<2xf32, #tpu.memory_space<smem>>
    %2 = vector.broadcast %1 : f32 to vector<16x128xf32>
    %c1 = arith.constant 1 : index
    %3 = memref.load %arg2[%c1] : memref<2xf32, #tpu.memory_space<smem>>
    %4 = vector.broadcast %3 : f32 to vector<16x128xf32>
    %c0_2 = arith.constant 0 : index
    %5 = memref.load %arg3[%c0_2] : memref<32xf32, #tpu.memory_space<smem>>
    %6 = vector.broadcast %5 : f32 to vector<16x128xf32>
    %7 = arith.cmpf oge, %0, %6 : vector<16x128xf32>
    %c0_3 = arith.constant 0 : index
    %8 = memref.load %arg4[%c0_3] : memref<32xf32, #tpu.memory_space<smem>>
    %cst = arith.constant 0.000000e+00 : f32
    %9 = vector.broadcast %8 : f32 to vector<16x128xf32>
    %10 = vector.broadcast %cst : f32 to vector<16x128xf32>
    %11 = arith.select %7, %9, %10 : vector<16x128xi1>, vector<16x128xf32>
    %12 = arith.addf %2, %11 : vector<16x128xf32>
    %c0_4 = arith.constant 0 : index
    %13 = memref.load %arg5[%c0_4] : memref<32xf32, #tpu.memory_space<smem>>
    %cst_5 = arith.constant 0.000000e+00 : f32
    %14 = vector.broadcast %13 : f32 to vector<16x128xf32>
    %15 = vector.broadcast %cst_5 : f32 to vector<16x128xf32>
    %16 = arith.select %7, %14, %15 : vector<16x128xi1>, vector<16x128xf32>
    %17 = arith.addf %4, %16 : vector<16x128xf32>
    %c1_6 = arith.constant 1 : index
    %18 = memref.load %arg3[%c1_6] : memref<32xf32, #tpu.memory_space<smem>>
    %19 = vector.broadcast %18 : f32 to vector<16x128xf32>
    %20 = arith.cmpf oge, %0, %19 : vector<16x128xf32>
    %c1_7 = arith.constant 1 : index
    %21 = memref.load %arg4[%c1_7] : memref<32xf32, #tpu.memory_space<smem>>
    %cst_8 = arith.constant 0.000000e+00 : f32
    %22 = vector.broadcast %21 : f32 to vector<16x128xf32>
    %23 = vector.broadcast %cst_8 : f32 to vector<16x128xf32>
    %24 = arith.select %20, %22, %23 : vector<16x128xi1>, vector<16x128xf32>
    %25 = arith.addf %12, %24 : vector<16x128xf32>
    %c1_9 = arith.constant 1 : index
    %26 = memref.load %arg5[%c1_9] : memref<32xf32, #tpu.memory_space<smem>>
    %cst_10 = arith.constant 0.000000e+00 : f32
    %27 = vector.broadcast %26 : f32 to vector<16x128xf32>
    %28 = vector.broadcast %cst_10 : f32 to vector<16x128xf32>
    %29 = arith.select %20, %27, %28 : vector<16x128xi1>, vector<16x128xf32>
    %30 = arith.addf %17, %29 : vector<16x128xf32>
    %c2 = arith.constant 2 : index
    %31 = memref.load %arg3[%c2] : memref<32xf32, #tpu.memory_space<smem>>
    %32 = vector.broadcast %31 : f32 to vector<16x128xf32>
    %33 = arith.cmpf oge, %0, %32 : vector<16x128xf32>
    %c2_11 = arith.constant 2 : index
    %34 = memref.load %arg4[%c2_11] : memref<32xf32, #tpu.memory_space<smem>>
    %cst_12 = arith.constant 0.000000e+00 : f32
    %35 = vector.broadcast %34 : f32 to vector<16x128xf32>
    %36 = vector.broadcast %cst_12 : f32 to vector<16x128xf32>
    %37 = arith.select %33, %35, %36 : vector<16x128xi1>, vector<16x128xf32>
    %38 = arith.addf %25, %37 : vector<16x128xf32>
    %c2_13 = arith.constant 2 : index
    %39 = memref.load %arg5[%c2_13] : memref<32xf32, #tpu.memory_space<smem>>
    %cst_14 = arith.constant 0.000000e+00 : f32
    %40 = vector.broadcast %39 : f32 to vector<16x128xf32>
    %41 = vector.broadcast %cst_14 : f32 to vector<16x128xf32>
    %42 = arith.select %33, %40, %41 : vector<16x128xi1>, vector<16x128xf32>
    %43 = arith.addf %30, %42 : vector<16x128xf32>
    %c3 = arith.constant 3 : index
    %44 = memref.load %arg3[%c3] : memref<32xf32, #tpu.memory_space<smem>>
    %45 = vector.broadcast %44 : f32 to vector<16x128xf32>
    %46 = arith.cmpf oge, %0, %45 : vector<16x128xf32>
    %c3_15 = arith.constant 3 : index
    %47 = memref.load %arg4[%c3_15] : memref<32xf32, #tpu.memory_space<smem>>
    %cst_16 = arith.constant 0.000000e+00 : f32
    %48 = vector.broadcast %47 : f32 to vector<16x128xf32>
    %49 = vector.broadcast %cst_16 : f32 to vector<16x128xf32>
    %50 = arith.select %46, %48, %49 : vector<16x128xi1>, vector<16x128xf32>
    %51 = arith.addf %38, %50 : vector<16x128xf32>
    %c3_17 = arith.constant 3 : index
    %52 = memref.load %arg5[%c3_17] : memref<32xf32, #tpu.memory_space<smem>>
    %cst_18 = arith.constant 0.000000e+00 : f32
    %53 = vector.broadcast %52 : f32 to vector<16x128xf32>
    %54 = vector.broadcast %cst_18 : f32 to vector<16x128xf32>
    %55 = arith.select %46, %53, %54 : vector<16x128xi1>, vector<16x128xf32>
    %56 = arith.addf %43, %55 : vector<16x128xf32>
    %c4 = arith.constant 4 : index
    %57 = memref.load %arg3[%c4] : memref<32xf32, #tpu.memory_space<smem>>
    %58 = vector.broadcast %57 : f32 to vector<16x128xf32>
    %59 = arith.cmpf oge, %0, %58 : vector<16x128xf32>
    %c4_19 = arith.constant 4 : index
    %60 = memref.load %arg4[%c4_19] : memref<32xf32, #tpu.memory_space<smem>>
    %cst_20 = arith.constant 0.000000e+00 : f32
    %61 = vector.broadcast %60 : f32 to vector<16x128xf32>
    %62 = vector.broadcast %cst_20 : f32 to vector<16x128xf32>
    %63 = arith.select %59, %61, %62 : vector<16x128xi1>, vector<16x128xf32>
    %64 = arith.addf %51, %63 : vector<16x128xf32>
    %c4_21 = arith.constant 4 : index
    %65 = memref.load %arg5[%c4_21] : memref<32xf32, #tpu.memory_space<smem>>
    %cst_22 = arith.constant 0.000000e+00 : f32
    %66 = vector.broadcast %65 : f32 to vector<16x128xf32>
    %67 = vector.broadcast %cst_22 : f32 to vector<16x128xf32>
    %68 = arith.select %59, %66, %67 : vector<16x128xi1>, vector<16x128xf32>
    %69 = arith.addf %56, %68 : vector<16x128xf32>
    %c5 = arith.constant 5 : index
    %70 = memref.load %arg3[%c5] : memref<32xf32, #tpu.memory_space<smem>>
    %71 = vector.broadcast %70 : f32 to vector<16x128xf32>
    %72 = arith.cmpf oge, %0, %71 : vector<16x128xf32>
    %c5_23 = arith.constant 5 : index
    %73 = memref.load %arg4[%c5_23] : memref<32xf32, #tpu.memory_space<smem>>
    %cst_24 = arith.constant 0.000000e+00 : f32
    %74 = vector.broadcast %73 : f32 to vector<16x128xf32>
    %75 = vector.broadcast %cst_24 : f32 to vector<16x128xf32>
    %76 = arith.select %72, %74, %75 : vector<16x128xi1>, vector<16x128xf32>
    %77 = arith.addf %64, %76 : vector<16x128xf32>
    %c5_25 = arith.constant 5 : index
    %78 = memref.load %arg5[%c5_25] : memref<32xf32, #tpu.memory_space<smem>>
    %cst_26 = arith.constant 0.000000e+00 : f32
    %79 = vector.broadcast %78 : f32 to vector<16x128xf32>
    %80 = vector.broadcast %cst_26 : f32 to vector<16x128xf32>
    %81 = arith.select %72, %79, %80 : vector<16x128xi1>, vector<16x128xf32>
    %82 = arith.addf %69, %81 : vector<16x128xf32>
    %c6 = arith.constant 6 : index
    %83 = memref.load %arg3[%c6] : memref<32xf32, #tpu.memory_space<smem>>
    %84 = vector.broadcast %83 : f32 to vector<16x128xf32>
    %85 = arith.cmpf oge, %0, %84 : vector<16x128xf32>
    %c6_27 = arith.constant 6 : index
    %86 = memref.load %arg4[%c6_27] : memref<32xf32, #tpu.memory_space<smem>>
    %cst_28 = arith.constant 0.000000e+00 : f32
    %87 = vector.broadcast %86 : f32 to vector<16x128xf32>
    %88 = vector.broadcast %cst_28 : f32 to vector<16x128xf32>
    %89 = arith.select %85, %87, %88 : vector<16x128xi1>, vector<16x128xf32>
    %90 = arith.addf %77, %89 : vector<16x128xf32>
    %c6_29 = arith.constant 6 : index
    %91 = memref.load %arg5[%c6_29] : memref<32xf32, #tpu.memory_space<smem>>
    %cst_30 = arith.constant 0.000000e+00 : f32
    %92 = vector.broadcast %91 : f32 to vector<16x128xf32>
    %93 = vector.broadcast %cst_30 : f32 to vector<16x128xf32>
    %94 = arith.select %85, %92, %93 : vector<16x128xi1>, vector<16x128xf32>
    %95 = arith.addf %82, %94 : vector<16x128xf32>
    %c7 = arith.constant 7 : index
    %96 = memref.load %arg3[%c7] : memref<32xf32, #tpu.memory_space<smem>>
    %97 = vector.broadcast %96 : f32 to vector<16x128xf32>
    %98 = arith.cmpf oge, %0, %97 : vector<16x128xf32>
    %c7_31 = arith.constant 7 : index
    %99 = memref.load %arg4[%c7_31] : memref<32xf32, #tpu.memory_space<smem>>
    %cst_32 = arith.constant 0.000000e+00 : f32
    %100 = vector.broadcast %99 : f32 to vector<16x128xf32>
    %101 = vector.broadcast %cst_32 : f32 to vector<16x128xf32>
    %102 = arith.select %98, %100, %101 : vector<16x128xi1>, vector<16x128xf32>
    %103 = arith.addf %90, %102 : vector<16x128xf32>
    %c7_33 = arith.constant 7 : index
    %104 = memref.load %arg5[%c7_33] : memref<32xf32, #tpu.memory_space<smem>>
    %cst_34 = arith.constant 0.000000e+00 : f32
    %105 = vector.broadcast %104 : f32 to vector<16x128xf32>
    %106 = vector.broadcast %cst_34 : f32 to vector<16x128xf32>
    %107 = arith.select %98, %105, %106 : vector<16x128xi1>, vector<16x128xf32>
    %108 = arith.addf %95, %107 : vector<16x128xf32>
    %c8 = arith.constant 8 : index
    %109 = memref.load %arg3[%c8] : memref<32xf32, #tpu.memory_space<smem>>
    %110 = vector.broadcast %109 : f32 to vector<16x128xf32>
    %111 = arith.cmpf oge, %0, %110 : vector<16x128xf32>
    %c8_35 = arith.constant 8 : index
    %112 = memref.load %arg4[%c8_35] : memref<32xf32, #tpu.memory_space<smem>>
    %cst_36 = arith.constant 0.000000e+00 : f32
    %113 = vector.broadcast %112 : f32 to vector<16x128xf32>
    %114 = vector.broadcast %cst_36 : f32 to vector<16x128xf32>
    %115 = arith.select %111, %113, %114 : vector<16x128xi1>, vector<16x128xf32>
    %116 = arith.addf %103, %115 : vector<16x128xf32>
    %c8_37 = arith.constant 8 : index
    %117 = memref.load %arg5[%c8_37] : memref<32xf32, #tpu.memory_space<smem>>
    %cst_38 = arith.constant 0.000000e+00 : f32
    %118 = vector.broadcast %117 : f32 to vector<16x128xf32>
    %119 = vector.broadcast %cst_38 : f32 to vector<16x128xf32>
    %120 = arith.select %111, %118, %119 : vector<16x128xi1>, vector<16x128xf32>
    %121 = arith.addf %108, %120 : vector<16x128xf32>
    %c9 = arith.constant 9 : index
    %122 = memref.load %arg3[%c9] : memref<32xf32, #tpu.memory_space<smem>>
    %123 = vector.broadcast %122 : f32 to vector<16x128xf32>
    %124 = arith.cmpf oge, %0, %123 : vector<16x128xf32>
    %c9_39 = arith.constant 9 : index
    %125 = memref.load %arg4[%c9_39] : memref<32xf32, #tpu.memory_space<smem>>
    %cst_40 = arith.constant 0.000000e+00 : f32
    %126 = vector.broadcast %125 : f32 to vector<16x128xf32>
    %127 = vector.broadcast %cst_40 : f32 to vector<16x128xf32>
    %128 = arith.select %124, %126, %127 : vector<16x128xi1>, vector<16x128xf32>
    %129 = arith.addf %116, %128 : vector<16x128xf32>
    %c9_41 = arith.constant 9 : index
    %130 = memref.load %arg5[%c9_41] : memref<32xf32, #tpu.memory_space<smem>>
    %cst_42 = arith.constant 0.000000e+00 : f32
    %131 = vector.broadcast %130 : f32 to vector<16x128xf32>
    %132 = vector.broadcast %cst_42 : f32 to vector<16x128xf32>
    %133 = arith.select %124, %131, %132 : vector<16x128xi1>, vector<16x128xf32>
    %134 = arith.addf %121, %133 : vector<16x128xf32>
    %c10 = arith.constant 10 : index
    %135 = memref.load %arg3[%c10] : memref<32xf32, #tpu.memory_space<smem>>
    %136 = vector.broadcast %135 : f32 to vector<16x128xf32>
    %137 = arith.cmpf oge, %0, %136 : vector<16x128xf32>
    %c10_43 = arith.constant 10 : index
    %138 = memref.load %arg4[%c10_43] : memref<32xf32, #tpu.memory_space<smem>>
    %cst_44 = arith.constant 0.000000e+00 : f32
    %139 = vector.broadcast %138 : f32 to vector<16x128xf32>
    %140 = vector.broadcast %cst_44 : f32 to vector<16x128xf32>
    %141 = arith.select %137, %139, %140 : vector<16x128xi1>, vector<16x128xf32>
    %142 = arith.addf %129, %141 : vector<16x128xf32>
    %c10_45 = arith.constant 10 : index
    %143 = memref.load %arg5[%c10_45] : memref<32xf32, #tpu.memory_space<smem>>
    %cst_46 = arith.constant 0.000000e+00 : f32
    %144 = vector.broadcast %143 : f32 to vector<16x128xf32>
    %145 = vector.broadcast %cst_46 : f32 to vector<16x128xf32>
    %146 = arith.select %137, %144, %145 : vector<16x128xi1>, vector<16x128xf32>
    %147 = arith.addf %134, %146 : vector<16x128xf32>
    %c11 = arith.constant 11 : index
    %148 = memref.load %arg3[%c11] : memref<32xf32, #tpu.memory_space<smem>>
    %149 = vector.broadcast %148 : f32 to vector<16x128xf32>
    %150 = arith.cmpf oge, %0, %149 : vector<16x128xf32>
    %c11_47 = arith.constant 11 : index
    %151 = memref.load %arg4[%c11_47] : memref<32xf32, #tpu.memory_space<smem>>
    %cst_48 = arith.constant 0.000000e+00 : f32
    %152 = vector.broadcast %151 : f32 to vector<16x128xf32>
    %153 = vector.broadcast %cst_48 : f32 to vector<16x128xf32>
    %154 = arith.select %150, %152, %153 : vector<16x128xi1>, vector<16x128xf32>
    %155 = arith.addf %142, %154 : vector<16x128xf32>
    %c11_49 = arith.constant 11 : index
    %156 = memref.load %arg5[%c11_49] : memref<32xf32, #tpu.memory_space<smem>>
    %cst_50 = arith.constant 0.000000e+00 : f32
    %157 = vector.broadcast %156 : f32 to vector<16x128xf32>
    %158 = vector.broadcast %cst_50 : f32 to vector<16x128xf32>
    %159 = arith.select %150, %157, %158 : vector<16x128xi1>, vector<16x128xf32>
    %160 = arith.addf %147, %159 : vector<16x128xf32>
    %c12 = arith.constant 12 : index
    %161 = memref.load %arg3[%c12] : memref<32xf32, #tpu.memory_space<smem>>
    %162 = vector.broadcast %161 : f32 to vector<16x128xf32>
    %163 = arith.cmpf oge, %0, %162 : vector<16x128xf32>
    %c12_51 = arith.constant 12 : index
    %164 = memref.load %arg4[%c12_51] : memref<32xf32, #tpu.memory_space<smem>>
    %cst_52 = arith.constant 0.000000e+00 : f32
    %165 = vector.broadcast %164 : f32 to vector<16x128xf32>
    %166 = vector.broadcast %cst_52 : f32 to vector<16x128xf32>
    %167 = arith.select %163, %165, %166 : vector<16x128xi1>, vector<16x128xf32>
    %168 = arith.addf %155, %167 : vector<16x128xf32>
    %c12_53 = arith.constant 12 : index
    %169 = memref.load %arg5[%c12_53] : memref<32xf32, #tpu.memory_space<smem>>
    %cst_54 = arith.constant 0.000000e+00 : f32
    %170 = vector.broadcast %169 : f32 to vector<16x128xf32>
    %171 = vector.broadcast %cst_54 : f32 to vector<16x128xf32>
    %172 = arith.select %163, %170, %171 : vector<16x128xi1>, vector<16x128xf32>
    %173 = arith.addf %160, %172 : vector<16x128xf32>
    %c13 = arith.constant 13 : index
    %174 = memref.load %arg3[%c13] : memref<32xf32, #tpu.memory_space<smem>>
    %175 = vector.broadcast %174 : f32 to vector<16x128xf32>
    %176 = arith.cmpf oge, %0, %175 : vector<16x128xf32>
    %c13_55 = arith.constant 13 : index
    %177 = memref.load %arg4[%c13_55] : memref<32xf32, #tpu.memory_space<smem>>
    %cst_56 = arith.constant 0.000000e+00 : f32
    %178 = vector.broadcast %177 : f32 to vector<16x128xf32>
    %179 = vector.broadcast %cst_56 : f32 to vector<16x128xf32>
    %180 = arith.select %176, %178, %179 : vector<16x128xi1>, vector<16x128xf32>
    %181 = arith.addf %168, %180 : vector<16x128xf32>
    %c13_57 = arith.constant 13 : index
    %182 = memref.load %arg5[%c13_57] : memref<32xf32, #tpu.memory_space<smem>>
    %cst_58 = arith.constant 0.000000e+00 : f32
    %183 = vector.broadcast %182 : f32 to vector<16x128xf32>
    %184 = vector.broadcast %cst_58 : f32 to vector<16x128xf32>
    %185 = arith.select %176, %183, %184 : vector<16x128xi1>, vector<16x128xf32>
    %186 = arith.addf %173, %185 : vector<16x128xf32>
    %c14 = arith.constant 14 : index
    %187 = memref.load %arg3[%c14] : memref<32xf32, #tpu.memory_space<smem>>
    %188 = vector.broadcast %187 : f32 to vector<16x128xf32>
    %189 = arith.cmpf oge, %0, %188 : vector<16x128xf32>
    %c14_59 = arith.constant 14 : index
    %190 = memref.load %arg4[%c14_59] : memref<32xf32, #tpu.memory_space<smem>>
    %cst_60 = arith.constant 0.000000e+00 : f32
    %191 = vector.broadcast %190 : f32 to vector<16x128xf32>
    %192 = vector.broadcast %cst_60 : f32 to vector<16x128xf32>
    %193 = arith.select %189, %191, %192 : vector<16x128xi1>, vector<16x128xf32>
    %194 = arith.addf %181, %193 : vector<16x128xf32>
    %c14_61 = arith.constant 14 : index
    %195 = memref.load %arg5[%c14_61] : memref<32xf32, #tpu.memory_space<smem>>
    %cst_62 = arith.constant 0.000000e+00 : f32
    %196 = vector.broadcast %195 : f32 to vector<16x128xf32>
    %197 = vector.broadcast %cst_62 : f32 to vector<16x128xf32>
    %198 = arith.select %189, %196, %197 : vector<16x128xi1>, vector<16x128xf32>
    %199 = arith.addf %186, %198 : vector<16x128xf32>
    %c15 = arith.constant 15 : index
    %200 = memref.load %arg3[%c15] : memref<32xf32, #tpu.memory_space<smem>>
    %201 = vector.broadcast %200 : f32 to vector<16x128xf32>
    %202 = arith.cmpf oge, %0, %201 : vector<16x128xf32>
    %c15_63 = arith.constant 15 : index
    %203 = memref.load %arg4[%c15_63] : memref<32xf32, #tpu.memory_space<smem>>
    %cst_64 = arith.constant 0.000000e+00 : f32
    %204 = vector.broadcast %203 : f32 to vector<16x128xf32>
    %205 = vector.broadcast %cst_64 : f32 to vector<16x128xf32>
    %206 = arith.select %202, %204, %205 : vector<16x128xi1>, vector<16x128xf32>
    %207 = arith.addf %194, %206 : vector<16x128xf32>
    %c15_65 = arith.constant 15 : index
    %208 = memref.load %arg5[%c15_65] : memref<32xf32, #tpu.memory_space<smem>>
    %cst_66 = arith.constant 0.000000e+00 : f32
    %209 = vector.broadcast %208 : f32 to vector<16x128xf32>
    %210 = vector.broadcast %cst_66 : f32 to vector<16x128xf32>
    %211 = arith.select %202, %209, %210 : vector<16x128xi1>, vector<16x128xf32>
    %212 = arith.addf %199, %211 : vector<16x128xf32>
    %c16 = arith.constant 16 : index
    %213 = memref.load %arg3[%c16] : memref<32xf32, #tpu.memory_space<smem>>
    %214 = vector.broadcast %213 : f32 to vector<16x128xf32>
    %215 = arith.cmpf oge, %0, %214 : vector<16x128xf32>
    %c16_67 = arith.constant 16 : index
    %216 = memref.load %arg4[%c16_67] : memref<32xf32, #tpu.memory_space<smem>>
    %cst_68 = arith.constant 0.000000e+00 : f32
    %217 = vector.broadcast %216 : f32 to vector<16x128xf32>
    %218 = vector.broadcast %cst_68 : f32 to vector<16x128xf32>
    %219 = arith.select %215, %217, %218 : vector<16x128xi1>, vector<16x128xf32>
    %220 = arith.addf %207, %219 : vector<16x128xf32>
    %c16_69 = arith.constant 16 : index
    %221 = memref.load %arg5[%c16_69] : memref<32xf32, #tpu.memory_space<smem>>
    %cst_70 = arith.constant 0.000000e+00 : f32
    %222 = vector.broadcast %221 : f32 to vector<16x128xf32>
    %223 = vector.broadcast %cst_70 : f32 to vector<16x128xf32>
    %224 = arith.select %215, %222, %223 : vector<16x128xi1>, vector<16x128xf32>
    %225 = arith.addf %212, %224 : vector<16x128xf32>
    %c17 = arith.constant 17 : index
    %226 = memref.load %arg3[%c17] : memref<32xf32, #tpu.memory_space<smem>>
    %227 = vector.broadcast %226 : f32 to vector<16x128xf32>
    %228 = arith.cmpf oge, %0, %227 : vector<16x128xf32>
    %c17_71 = arith.constant 17 : index
    %229 = memref.load %arg4[%c17_71] : memref<32xf32, #tpu.memory_space<smem>>
    %cst_72 = arith.constant 0.000000e+00 : f32
    %230 = vector.broadcast %229 : f32 to vector<16x128xf32>
    %231 = vector.broadcast %cst_72 : f32 to vector<16x128xf32>
    %232 = arith.select %228, %230, %231 : vector<16x128xi1>, vector<16x128xf32>
    %233 = arith.addf %220, %232 : vector<16x128xf32>
    %c17_73 = arith.constant 17 : index
    %234 = memref.load %arg5[%c17_73] : memref<32xf32, #tpu.memory_space<smem>>
    %cst_74 = arith.constant 0.000000e+00 : f32
    %235 = vector.broadcast %234 : f32 to vector<16x128xf32>
    %236 = vector.broadcast %cst_74 : f32 to vector<16x128xf32>
    %237 = arith.select %228, %235, %236 : vector<16x128xi1>, vector<16x128xf32>
    %238 = arith.addf %225, %237 : vector<16x128xf32>
    %c18 = arith.constant 18 : index
    %239 = memref.load %arg3[%c18] : memref<32xf32, #tpu.memory_space<smem>>
    %240 = vector.broadcast %239 : f32 to vector<16x128xf32>
    %241 = arith.cmpf oge, %0, %240 : vector<16x128xf32>
    %c18_75 = arith.constant 18 : index
    %242 = memref.load %arg4[%c18_75] : memref<32xf32, #tpu.memory_space<smem>>
    %cst_76 = arith.constant 0.000000e+00 : f32
    %243 = vector.broadcast %242 : f32 to vector<16x128xf32>
    %244 = vector.broadcast %cst_76 : f32 to vector<16x128xf32>
    %245 = arith.select %241, %243, %244 : vector<16x128xi1>, vector<16x128xf32>
    %246 = arith.addf %233, %245 : vector<16x128xf32>
    %c18_77 = arith.constant 18 : index
    %247 = memref.load %arg5[%c18_77] : memref<32xf32, #tpu.memory_space<smem>>
    %cst_78 = arith.constant 0.000000e+00 : f32
    %248 = vector.broadcast %247 : f32 to vector<16x128xf32>
    %249 = vector.broadcast %cst_78 : f32 to vector<16x128xf32>
    %250 = arith.select %241, %248, %249 : vector<16x128xi1>, vector<16x128xf32>
    %251 = arith.addf %238, %250 : vector<16x128xf32>
    %c19 = arith.constant 19 : index
    %252 = memref.load %arg3[%c19] : memref<32xf32, #tpu.memory_space<smem>>
    %253 = vector.broadcast %252 : f32 to vector<16x128xf32>
    %254 = arith.cmpf oge, %0, %253 : vector<16x128xf32>
    %c19_79 = arith.constant 19 : index
    %255 = memref.load %arg4[%c19_79] : memref<32xf32, #tpu.memory_space<smem>>
    %cst_80 = arith.constant 0.000000e+00 : f32
    %256 = vector.broadcast %255 : f32 to vector<16x128xf32>
    %257 = vector.broadcast %cst_80 : f32 to vector<16x128xf32>
    %258 = arith.select %254, %256, %257 : vector<16x128xi1>, vector<16x128xf32>
    %259 = arith.addf %246, %258 : vector<16x128xf32>
    %c19_81 = arith.constant 19 : index
    %260 = memref.load %arg5[%c19_81] : memref<32xf32, #tpu.memory_space<smem>>
    %cst_82 = arith.constant 0.000000e+00 : f32
    %261 = vector.broadcast %260 : f32 to vector<16x128xf32>
    %262 = vector.broadcast %cst_82 : f32 to vector<16x128xf32>
    %263 = arith.select %254, %261, %262 : vector<16x128xi1>, vector<16x128xf32>
    %264 = arith.addf %251, %263 : vector<16x128xf32>
    %c20 = arith.constant 20 : index
    %265 = memref.load %arg3[%c20] : memref<32xf32, #tpu.memory_space<smem>>
    %266 = vector.broadcast %265 : f32 to vector<16x128xf32>
    %267 = arith.cmpf oge, %0, %266 : vector<16x128xf32>
    %c20_83 = arith.constant 20 : index
    %268 = memref.load %arg4[%c20_83] : memref<32xf32, #tpu.memory_space<smem>>
    %cst_84 = arith.constant 0.000000e+00 : f32
    %269 = vector.broadcast %268 : f32 to vector<16x128xf32>
    %270 = vector.broadcast %cst_84 : f32 to vector<16x128xf32>
    %271 = arith.select %267, %269, %270 : vector<16x128xi1>, vector<16x128xf32>
    %272 = arith.addf %259, %271 : vector<16x128xf32>
    %c20_85 = arith.constant 20 : index
    %273 = memref.load %arg5[%c20_85] : memref<32xf32, #tpu.memory_space<smem>>
    %cst_86 = arith.constant 0.000000e+00 : f32
    %274 = vector.broadcast %273 : f32 to vector<16x128xf32>
    %275 = vector.broadcast %cst_86 : f32 to vector<16x128xf32>
    %276 = arith.select %267, %274, %275 : vector<16x128xi1>, vector<16x128xf32>
    %277 = arith.addf %264, %276 : vector<16x128xf32>
    %c21 = arith.constant 21 : index
    %278 = memref.load %arg3[%c21] : memref<32xf32, #tpu.memory_space<smem>>
    %279 = vector.broadcast %278 : f32 to vector<16x128xf32>
    %280 = arith.cmpf oge, %0, %279 : vector<16x128xf32>
    %c21_87 = arith.constant 21 : index
    %281 = memref.load %arg4[%c21_87] : memref<32xf32, #tpu.memory_space<smem>>
    %cst_88 = arith.constant 0.000000e+00 : f32
    %282 = vector.broadcast %281 : f32 to vector<16x128xf32>
    %283 = vector.broadcast %cst_88 : f32 to vector<16x128xf32>
    %284 = arith.select %280, %282, %283 : vector<16x128xi1>, vector<16x128xf32>
    %285 = arith.addf %272, %284 : vector<16x128xf32>
    %c21_89 = arith.constant 21 : index
    %286 = memref.load %arg5[%c21_89] : memref<32xf32, #tpu.memory_space<smem>>
    %cst_90 = arith.constant 0.000000e+00 : f32
    %287 = vector.broadcast %286 : f32 to vector<16x128xf32>
    %288 = vector.broadcast %cst_90 : f32 to vector<16x128xf32>
    %289 = arith.select %280, %287, %288 : vector<16x128xi1>, vector<16x128xf32>
    %290 = arith.addf %277, %289 : vector<16x128xf32>
    %c22 = arith.constant 22 : index
    %291 = memref.load %arg3[%c22] : memref<32xf32, #tpu.memory_space<smem>>
    %292 = vector.broadcast %291 : f32 to vector<16x128xf32>
    %293 = arith.cmpf oge, %0, %292 : vector<16x128xf32>
    %c22_91 = arith.constant 22 : index
    %294 = memref.load %arg4[%c22_91] : memref<32xf32, #tpu.memory_space<smem>>
    %cst_92 = arith.constant 0.000000e+00 : f32
    %295 = vector.broadcast %294 : f32 to vector<16x128xf32>
    %296 = vector.broadcast %cst_92 : f32 to vector<16x128xf32>
    %297 = arith.select %293, %295, %296 : vector<16x128xi1>, vector<16x128xf32>
    %298 = arith.addf %285, %297 : vector<16x128xf32>
    %c22_93 = arith.constant 22 : index
    %299 = memref.load %arg5[%c22_93] : memref<32xf32, #tpu.memory_space<smem>>
    %cst_94 = arith.constant 0.000000e+00 : f32
    %300 = vector.broadcast %299 : f32 to vector<16x128xf32>
    %301 = vector.broadcast %cst_94 : f32 to vector<16x128xf32>
    %302 = arith.select %293, %300, %301 : vector<16x128xi1>, vector<16x128xf32>
    %303 = arith.addf %290, %302 : vector<16x128xf32>
    %c23 = arith.constant 23 : index
    %304 = memref.load %arg3[%c23] : memref<32xf32, #tpu.memory_space<smem>>
    %305 = vector.broadcast %304 : f32 to vector<16x128xf32>
    %306 = arith.cmpf oge, %0, %305 : vector<16x128xf32>
    %c23_95 = arith.constant 23 : index
    %307 = memref.load %arg4[%c23_95] : memref<32xf32, #tpu.memory_space<smem>>
    %cst_96 = arith.constant 0.000000e+00 : f32
    %308 = vector.broadcast %307 : f32 to vector<16x128xf32>
    %309 = vector.broadcast %cst_96 : f32 to vector<16x128xf32>
    %310 = arith.select %306, %308, %309 : vector<16x128xi1>, vector<16x128xf32>
    %311 = arith.addf %298, %310 : vector<16x128xf32>
    %c23_97 = arith.constant 23 : index
    %312 = memref.load %arg5[%c23_97] : memref<32xf32, #tpu.memory_space<smem>>
    %cst_98 = arith.constant 0.000000e+00 : f32
    %313 = vector.broadcast %312 : f32 to vector<16x128xf32>
    %314 = vector.broadcast %cst_98 : f32 to vector<16x128xf32>
    %315 = arith.select %306, %313, %314 : vector<16x128xi1>, vector<16x128xf32>
    %316 = arith.addf %303, %315 : vector<16x128xf32>
    %c24 = arith.constant 24 : index
    %317 = memref.load %arg3[%c24] : memref<32xf32, #tpu.memory_space<smem>>
    %318 = vector.broadcast %317 : f32 to vector<16x128xf32>
    %319 = arith.cmpf oge, %0, %318 : vector<16x128xf32>
    %c24_99 = arith.constant 24 : index
    %320 = memref.load %arg4[%c24_99] : memref<32xf32, #tpu.memory_space<smem>>
    %cst_100 = arith.constant 0.000000e+00 : f32
    %321 = vector.broadcast %320 : f32 to vector<16x128xf32>
    %322 = vector.broadcast %cst_100 : f32 to vector<16x128xf32>
    %323 = arith.select %319, %321, %322 : vector<16x128xi1>, vector<16x128xf32>
    %324 = arith.addf %311, %323 : vector<16x128xf32>
    %c24_101 = arith.constant 24 : index
    %325 = memref.load %arg5[%c24_101] : memref<32xf32, #tpu.memory_space<smem>>
    %cst_102 = arith.constant 0.000000e+00 : f32
    %326 = vector.broadcast %325 : f32 to vector<16x128xf32>
    %327 = vector.broadcast %cst_102 : f32 to vector<16x128xf32>
    %328 = arith.select %319, %326, %327 : vector<16x128xi1>, vector<16x128xf32>
    %329 = arith.addf %316, %328 : vector<16x128xf32>
    %c25 = arith.constant 25 : index
    %330 = memref.load %arg3[%c25] : memref<32xf32, #tpu.memory_space<smem>>
    %331 = vector.broadcast %330 : f32 to vector<16x128xf32>
    %332 = arith.cmpf oge, %0, %331 : vector<16x128xf32>
    %c25_103 = arith.constant 25 : index
    %333 = memref.load %arg4[%c25_103] : memref<32xf32, #tpu.memory_space<smem>>
    %cst_104 = arith.constant 0.000000e+00 : f32
    %334 = vector.broadcast %333 : f32 to vector<16x128xf32>
    %335 = vector.broadcast %cst_104 : f32 to vector<16x128xf32>
    %336 = arith.select %332, %334, %335 : vector<16x128xi1>, vector<16x128xf32>
    %337 = arith.addf %324, %336 : vector<16x128xf32>
    %c25_105 = arith.constant 25 : index
    %338 = memref.load %arg5[%c25_105] : memref<32xf32, #tpu.memory_space<smem>>
    %cst_106 = arith.constant 0.000000e+00 : f32
    %339 = vector.broadcast %338 : f32 to vector<16x128xf32>
    %340 = vector.broadcast %cst_106 : f32 to vector<16x128xf32>
    %341 = arith.select %332, %339, %340 : vector<16x128xi1>, vector<16x128xf32>
    %342 = arith.addf %329, %341 : vector<16x128xf32>
    %c26 = arith.constant 26 : index
    %343 = memref.load %arg3[%c26] : memref<32xf32, #tpu.memory_space<smem>>
    %344 = vector.broadcast %343 : f32 to vector<16x128xf32>
    %345 = arith.cmpf oge, %0, %344 : vector<16x128xf32>
    %c26_107 = arith.constant 26 : index
    %346 = memref.load %arg4[%c26_107] : memref<32xf32, #tpu.memory_space<smem>>
    %cst_108 = arith.constant 0.000000e+00 : f32
    %347 = vector.broadcast %346 : f32 to vector<16x128xf32>
    %348 = vector.broadcast %cst_108 : f32 to vector<16x128xf32>
    %349 = arith.select %345, %347, %348 : vector<16x128xi1>, vector<16x128xf32>
    %350 = arith.addf %337, %349 : vector<16x128xf32>
    %c26_109 = arith.constant 26 : index
    %351 = memref.load %arg5[%c26_109] : memref<32xf32, #tpu.memory_space<smem>>
    %cst_110 = arith.constant 0.000000e+00 : f32
    %352 = vector.broadcast %351 : f32 to vector<16x128xf32>
    %353 = vector.broadcast %cst_110 : f32 to vector<16x128xf32>
    %354 = arith.select %345, %352, %353 : vector<16x128xi1>, vector<16x128xf32>
    %355 = arith.addf %342, %354 : vector<16x128xf32>
    %c27 = arith.constant 27 : index
    %356 = memref.load %arg3[%c27] : memref<32xf32, #tpu.memory_space<smem>>
    %357 = vector.broadcast %356 : f32 to vector<16x128xf32>
    %358 = arith.cmpf oge, %0, %357 : vector<16x128xf32>
    %c27_111 = arith.constant 27 : index
    %359 = memref.load %arg4[%c27_111] : memref<32xf32, #tpu.memory_space<smem>>
    %cst_112 = arith.constant 0.000000e+00 : f32
    %360 = vector.broadcast %359 : f32 to vector<16x128xf32>
    %361 = vector.broadcast %cst_112 : f32 to vector<16x128xf32>
    %362 = arith.select %358, %360, %361 : vector<16x128xi1>, vector<16x128xf32>
    %363 = arith.addf %350, %362 : vector<16x128xf32>
    %c27_113 = arith.constant 27 : index
    %364 = memref.load %arg5[%c27_113] : memref<32xf32, #tpu.memory_space<smem>>
    %cst_114 = arith.constant 0.000000e+00 : f32
    %365 = vector.broadcast %364 : f32 to vector<16x128xf32>
    %366 = vector.broadcast %cst_114 : f32 to vector<16x128xf32>
    %367 = arith.select %358, %365, %366 : vector<16x128xi1>, vector<16x128xf32>
    %368 = arith.addf %355, %367 : vector<16x128xf32>
    %c28 = arith.constant 28 : index
    %369 = memref.load %arg3[%c28] : memref<32xf32, #tpu.memory_space<smem>>
    %370 = vector.broadcast %369 : f32 to vector<16x128xf32>
    %371 = arith.cmpf oge, %0, %370 : vector<16x128xf32>
    %c28_115 = arith.constant 28 : index
    %372 = memref.load %arg4[%c28_115] : memref<32xf32, #tpu.memory_space<smem>>
    %cst_116 = arith.constant 0.000000e+00 : f32
    %373 = vector.broadcast %372 : f32 to vector<16x128xf32>
    %374 = vector.broadcast %cst_116 : f32 to vector<16x128xf32>
    %375 = arith.select %371, %373, %374 : vector<16x128xi1>, vector<16x128xf32>
    %376 = arith.addf %363, %375 : vector<16x128xf32>
    %c28_117 = arith.constant 28 : index
    %377 = memref.load %arg5[%c28_117] : memref<32xf32, #tpu.memory_space<smem>>
    %cst_118 = arith.constant 0.000000e+00 : f32
    %378 = vector.broadcast %377 : f32 to vector<16x128xf32>
    %379 = vector.broadcast %cst_118 : f32 to vector<16x128xf32>
    %380 = arith.select %371, %378, %379 : vector<16x128xi1>, vector<16x128xf32>
    %381 = arith.addf %368, %380 : vector<16x128xf32>
    %c29 = arith.constant 29 : index
    %382 = memref.load %arg3[%c29] : memref<32xf32, #tpu.memory_space<smem>>
    %383 = vector.broadcast %382 : f32 to vector<16x128xf32>
    %384 = arith.cmpf oge, %0, %383 : vector<16x128xf32>
    %c29_119 = arith.constant 29 : index
    %385 = memref.load %arg4[%c29_119] : memref<32xf32, #tpu.memory_space<smem>>
    %cst_120 = arith.constant 0.000000e+00 : f32
    %386 = vector.broadcast %385 : f32 to vector<16x128xf32>
    %387 = vector.broadcast %cst_120 : f32 to vector<16x128xf32>
    %388 = arith.select %384, %386, %387 : vector<16x128xi1>, vector<16x128xf32>
    %389 = arith.addf %376, %388 : vector<16x128xf32>
    %c29_121 = arith.constant 29 : index
    %390 = memref.load %arg5[%c29_121] : memref<32xf32, #tpu.memory_space<smem>>
    %cst_122 = arith.constant 0.000000e+00 : f32
    %391 = vector.broadcast %390 : f32 to vector<16x128xf32>
    %392 = vector.broadcast %cst_122 : f32 to vector<16x128xf32>
    %393 = arith.select %384, %391, %392 : vector<16x128xi1>, vector<16x128xf32>
    %394 = arith.addf %381, %393 : vector<16x128xf32>
    %c30 = arith.constant 30 : index
    %395 = memref.load %arg3[%c30] : memref<32xf32, #tpu.memory_space<smem>>
    %396 = vector.broadcast %395 : f32 to vector<16x128xf32>
    %397 = arith.cmpf oge, %0, %396 : vector<16x128xf32>
    %c30_123 = arith.constant 30 : index
    %398 = memref.load %arg4[%c30_123] : memref<32xf32, #tpu.memory_space<smem>>
    %cst_124 = arith.constant 0.000000e+00 : f32
    %399 = vector.broadcast %398 : f32 to vector<16x128xf32>
    %400 = vector.broadcast %cst_124 : f32 to vector<16x128xf32>
    %401 = arith.select %397, %399, %400 : vector<16x128xi1>, vector<16x128xf32>
    %402 = arith.addf %389, %401 : vector<16x128xf32>
    %c30_125 = arith.constant 30 : index
    %403 = memref.load %arg5[%c30_125] : memref<32xf32, #tpu.memory_space<smem>>
    %cst_126 = arith.constant 0.000000e+00 : f32
    %404 = vector.broadcast %403 : f32 to vector<16x128xf32>
    %405 = vector.broadcast %cst_126 : f32 to vector<16x128xf32>
    %406 = arith.select %397, %404, %405 : vector<16x128xi1>, vector<16x128xf32>
    %407 = arith.addf %394, %406 : vector<16x128xf32>
    %c31 = arith.constant 31 : index
    %408 = memref.load %arg3[%c31] : memref<32xf32, #tpu.memory_space<smem>>
    %409 = vector.broadcast %408 : f32 to vector<16x128xf32>
    %410 = arith.cmpf oge, %0, %409 : vector<16x128xf32>
    %c31_127 = arith.constant 31 : index
    %411 = memref.load %arg4[%c31_127] : memref<32xf32, #tpu.memory_space<smem>>
    %cst_128 = arith.constant 0.000000e+00 : f32
    %412 = vector.broadcast %411 : f32 to vector<16x128xf32>
    %413 = vector.broadcast %cst_128 : f32 to vector<16x128xf32>
    %414 = arith.select %410, %412, %413 : vector<16x128xi1>, vector<16x128xf32>
    %415 = arith.addf %402, %414 : vector<16x128xf32>
    %c31_129 = arith.constant 31 : index
    %416 = memref.load %arg5[%c31_129] : memref<32xf32, #tpu.memory_space<smem>>
    %cst_130 = arith.constant 0.000000e+00 : f32
    %417 = vector.broadcast %416 : f32 to vector<16x128xf32>
    %418 = vector.broadcast %cst_130 : f32 to vector<16x128xf32>
    %419 = arith.select %410, %417, %418 : vector<16x128xi1>, vector<16x128xf32>
    %420 = arith.addf %407, %419 : vector<16x128xf32>
    %c0_131 = arith.constant 0 : index
    %c0_132 = arith.constant 0 : index
    %421 = vector.load %arg7[%c0_131, %c0_132] : memref<16x128xf32, #tpu.memory_space<vmem>>, vector<16x128xf32>
    tpu.vector_store %arg7[%c0_131, %c0_132], %415 {strides = array<i32>} : memref<16x128xf32, #tpu.memory_space<vmem>>, vector<16x128xf32>,
    %c0_i32 = arith.constant 0 : i32
    %422 = arith.cmpi ne, %arg0, %c0_i32 : i32
    %423 = arith.extui %422 : i1 to i32
    %c0_i32_133 = arith.constant 0 : i32
    %424 = arith.cmpi ne, %423, %c0_i32_133 : i32
    scf.if %424 {
      %cst_136 = arith.constant dense<0.000000e+00> : vector<128xf32>
      %428 = vector.multi_reduction <add>, %420, %cst_136 [0] : vector<16x128xf32> to vector<128xf32>
      %429 = vector.shape_cast %428 : vector<128xf32> to vector<1x128xf32>
      %c0_137 = arith.constant 0 : index
      %c0_138 = arith.constant 0 : index
      %430 = vector.load %arg8[%c0_137, %c0_138] : memref<1x128xf32, #tpu.memory_space<vmem>>, vector<1x128xf32>
      tpu.vector_store %arg8[%c0_137, %c0_138], %429 {strides = array<i32>} : memref<1x128xf32, #tpu.memory_space<vmem>>, vector<1x128xf32>,
    } else {
    }
    %c0_i32_134 = arith.constant 0 : i32
    %425 = arith.cmpi eq, %arg0, %c0_i32_134 : i32
    %426 = arith.extui %425 : i1 to i32
    %c0_i32_135 = arith.constant 0 : i32
    %427 = arith.cmpi ne, %426, %c0_i32_135 : i32
    scf.if %427 {
      %428 = tpu.iota {dimensions = array<i32: 0>} : vector<16x128xi32>
      %429 = tpu.iota {dimensions = array<i32: 1>} : vector<16x128xi32>
      %c16_i32 = arith.constant 16 : i32
      %430 = arith.muli %arg0, %c16_i32 : i32
      %431 = vector.broadcast %430 : i32 to vector<16x128xi32>
      %432 = arith.addi %431, %428 : vector<16x128xi32>
      %c128_i32 = arith.constant 128 : i32
      %433 = vector.broadcast %c128_i32 : i32 to vector<16x128xi32>
      %434 = arith.muli %432, %433 : vector<16x128xi32>
      %435 = arith.addi %434, %429 : vector<16x128xi32>
      %c0_136 = arith.constant 0 : index
      %436 = memref.load %arg1[%c0_136] : memref<1xi32, #tpu.memory_space<smem>>
      %437 = vector.broadcast %436 : i32 to vector<16x128xi32>
      %438 = arith.cmpi slt, %435, %437 : vector<16x128xi32>
      %cst_137 = arith.constant 0.000000e+00 : f32
      %439 = vector.broadcast %cst_137 : f32 to vector<16x128xf32>
      %440 = arith.select %438, %420, %439 : vector<16x128xi1>, vector<16x128xf32>
      %cst_138 = arith.constant dense<0.000000e+00> : vector<128xf32>
      %441 = vector.multi_reduction <add>, %440, %cst_138 [0] : vector<16x128xf32> to vector<128xf32>
      %442 = vector.shape_cast %441 : vector<128xf32> to vector<1x128xf32>
      %c0_139 = arith.constant 0 : index
      %c0_140 = arith.constant 0 : index
      %443 = vector.load %arg8[%c0_139, %c0_140] : memref<1x128xf32, #tpu.memory_space<vmem>>, vector<1x128xf32>
      tpu.vector_store %arg8[%c0_139, %c0_140], %442 {strides = array<i32>} : memref<1x128xf32, #tpu.memory_space<vmem>>, vector<1x128xf32>,
    } else {
    }
    return
  }
  func.func @transform_0(%arg0: i32) -> i32 {
    %c0_i32 = arith.constant 0 : i32
    %c0_i32_0 = arith.constant 0 : i32
    return %c0_i32 : i32
  }
  func.func @transform_1(%arg0: i32) -> i32 {
    %c0_i32 = arith.constant 0 : i32
    %c0_i32_0 = arith.constant 0 : i32
    return %c0_i32 : i32
  }
  func.func @transform_2(%arg0: i32) -> i32 {
    %c0_i32 = arith.constant 0 : i32
    %c0_i32_0 = arith.constant 0 : i32
    return %c0_i32 : i32
  }
  func.func @transform_3(%arg0: i32) -> i32 {
    %c0_i32 = arith.constant 0 : i32
    %c0_i32_0 = arith.constant 0 : i32
    return %c0_i32 : i32
  }
  func.func @transform_4(%arg0: i32) -> i32 {
    %c0_i32 = arith.constant 0 : i32
    %c0_i32_0 = arith.constant 0 : i32
    return %c0_i32 : i32
  }
  func.func @transform_5(%arg0: i32) -> (i32, i32) {
    %c0_i32 = arith.constant 0 : i32
    %c0_i32_0 = arith.constant 0 : i32
    return %arg0, %c0_i32 : i32, i32
  }
  func.func @transform_6(%arg0: i32) -> (i32, i32) {
    %c0_i32 = arith.constant 0 : i32
    %c0_i32_0 = arith.constant 0 : i32
    return %arg0, %c0_i32 : i32, i32
  }
  func.func @transform_7(%arg0: i32) -> (i32, i32) {
    %c0_i32 = arith.constant 0 : i32
    %c0_i32_0 = arith.constant 0 : i32
    return %arg0, %c0_i32 : i32, i32
  }
}

</mosaic_0001>

<bundles_post_ra>
// kernel: tpu_custom_call.1
= control target key start
LH: loop header
LB: loop body
LE: loop exit
PB: predicated region body
PF: predicated region fallthrough
CT: control target
= control target key end

     0   :  { %14 = vsyncpa [#allocation6], 0  ;;  %s1484_s0 = inlined_call_operand.<no memory space> [shape: s32[1], index: 0, kind: input, shape index: {}]   ;;  %s1485_s1 = inlined_call_operand.vmem [shape: f32[2], index: 1, kind: input, shape index: {}]   ;;  %s1486_s2 = inlined_call_operand.vmem [shape: f32[32], index: 2, kind: input, shape index: {}]   ;;  %s1487_s3 = inlined_call_operand.hbm [shape: f32[32], index: 3, kind: input, shape index: {}]   ;;  %s1488_s4 = inlined_call_operand.hbm [shape: f32[32], index: 4, kind: input, shape index: {}]   ;;  %s1489_s5 = inlined_call_operand.vmem [shape: f32[16,128], index: 5, kind: input, shape index: {}]   ;;  %s1490_s6 = inlined_call_operand.hbm [shape: f32[16,128], index: 6, kind: output, shape index: {0}]   ;;  %s1491_s7 = inlined_call_operand.hbm [shape: f32[1,128], index: 7, kind: output, shape index: {1}]  }
   0x1   :  { %15 = vsyncpa [#allocation8], 0 }
   0x2   :  { %16 = vsyncpa [#allocation5], 0 }
   0x3   :  { %17 = vsyncpa [#allocation11], 0 }
   0x4   :  { %18 = vsyncpa [#allocation4], 0 }
   0x5   :  { %19 = vsyncpa [#allocation14], 0  ;;  %s28_s26 = sshll.u32 %s1485_s1, 4  ;;  %s38_s29 = sshll.u32 %s1486_s2, 4  ;;  %s29_s26 = int_to_ptr.vmem [resolvable:$true] %s28_s26  ;;  %s39_s29 = int_to_ptr.vmem [resolvable:$true] %s38_s29 }
   0x6   :  { %s772_s30 = scalar_lea.vmem %s29_s26, 16  ;;  %p777_p1 = scmp.lt.s32.totalorder %s29_s26, %s29_s26 }
   0x7   :  { %p773_p0 = scmp.ne.s32.totalorder %s29_s26, %s772_s30  ;;  %p778_p2 = scmp.lt.s32.totalorder %s772_s30, %s772_s30 }
   0x9   :  { %p779_p3 = por %p778_p2, %p777_p1 }
   0xb   :  { %p780_p4 = pnand %p779_p3, %p773_p0 }
   0xd   :  { %783 = shalt.err (!%p780_p4)
}
   0xe   :  { %s872_s8 = smov [#allocation3]   ;;  %s784_s9 = scalar_lea.vmem %s39_s29, 16 }
   0xf   :  { %31 = dma.vmem_to_smem %s29_s26, 16, %s872_s8, [#allocation6]  }
  0x10   :  { %p785_p5 = scmp.ne.s32.totalorder %s39_s29, %s784_s9  ;;  %p789_p6 = scmp.lt.s32.totalorder %s39_s29, %s39_s29 }
  0x11   :  { %p790_p7 = scmp.lt.s32.totalorder %s784_s9, %s784_s9 }
  0x13   :  { %p791_p8 = por %p790_p7, %p789_p6 }
  0x15   :  { %p792_p9 = pnand %p791_p8, %p785_p5 }
  0x17   :  { %795 = shalt.err (!%p792_p9)
}
  0x18   :  { %s873_s1 = smov [#allocation7]   ;;  %s796_s11 = scalar_lea.hbm %s1487_s3, 16 }
  0x19   :  { %41 = dma.vmem_to_smem %s39_s29, 16, %s873_s1, [#allocation8]  }
  0x1a   :  { %p797_p10 = scmp.ne.s32.totalorder %s1487_s3, %s796_s11  ;;  %p800_p11 = scmp.lt.u32.totalorder %s796_s11, %s1487_s3 }
  0x1c   :  { %p802_p12 = pnand %p800_p11, %p797_p10 }
  0x1e   :  { %805 = shalt.err (!%p802_p12)
}
  0x1f   :  { %s874_s16 = smov [#allocation9]   ;;  %s806_s21 = scalar_lea.hbm %s1488_s4, 16 }
  0x20   :  { %49 = dma.hbm_to_smem %s1487_s3, 16, %s874_s16, [#allocation5]  }
  0x21   :  { %p807_p13 = scmp.ne.s32.totalorder %s1488_s4, %s806_s21  ;;  %p810_p0 = scmp.lt.u32.totalorder %s806_s21, %s1488_s4 }
  0x23   :  { %p812_p1 = pnand %p810_p0, %p807_p13 }
  0x25   :  { %815 = shalt.err (!%p812_p1)
}
  0x26   :  { %s875_s26 = smov [#allocation10]  }
  0x27   :  { %57 = dma.hbm_to_smem %s1488_s4, 16, %s875_s26, [#allocation11]  }
  0x28   :  { %860 = dma.done.wait [#allocation6], 16  }
  0x29   :  { %861 = vsyncadd [#allocation6], 4294967280 }
  0x2a   :  { %862 = dma.done.wait [#allocation8], 16  }
  0x2b   :  { %863 = vsyncadd [#allocation8], 4294967280 }
  0x2c   :  { %864 = dma.done.wait [#allocation5], 16  }
  0x2d   :  { %865 = vsyncadd [#allocation5], 4294967280 }
  0x2e   :  { %866 = dma.done.wait [#allocation11], 16  }
  0x2f   :  { %867 = vsyncadd [#allocation11], 4294967280 }
  0x30   :  { %72 = sfence }
  0x31   :  { %s950_s3 = sld [smem:[#allocation3]]  ;;  %s952_s29 = sld [smem:[#allocation3 + $0x1]]  ;;  %v609_v0 = vlaneseq  ;;  %v967_v5 = vld [vmem:[%s1489_s5] sm:$0xff]  ;;  %v972_v6 = vld [vmem:[%s1489_s5 + $0x8] sm:$0xff]  ;;  %v623_v9 = vstv %s1484_s0 }
  0x32   :  { %s79_s30 = sld [smem:[#allocation7]]  ;;  %s954_s4 = sld [smem:[#allocation7 + $0x1]] }
  0x33   :  { %s83_s8 = sld [smem:[#allocation9]]  ;;  %v610_v1 = vshrl.u32 %v609_v0, 7  ;;  %s956_s1 = sld [smem:[#allocation9 + $0x1]]  ;;  %v960_v2 = vand.u32 127, %v609_v0 }
  0x34   :  { %s89_s9 = sld [smem:[#allocation10]]  ;;  %s958_s2 = sld [smem:[#allocation10 + $0x1]] }
  0x35   :  { %v962_v3 = vadd.s32 8, %v610_v1  ;;  %v618_v4 = vmul.u32 128, %v610_v1  ;;  %s974_s14 = sld [smem:[#allocation7 + $0x2]]  ;;  %s982_s17 = sld [smem:[#allocation7 + $0x3]] }
  0x36   :  { %s976_s15 = sld [smem:[#allocation9 + $0x2]]  ;;  %s994_s5 = sld [smem:[#allocation9 + $0x3]] }
  0x37   :  { %v76_v7 = vstv %s950_s3  ;;  %v78_v8 = vstv %s952_s29  ;;  %s980_s16 = sld [smem:[#allocation10 + $0x2]]  ;;  %v619_v12 = vmul.u32 128, %v962_v3  ;;  %v989_v13 = vadd.s32 %v618_v4, %v960_v2  ;;  %s996_s20 = sld [smem:[#allocation10 + $0x3]] }
  0x38   :  { %v80_v10 = vstv %s79_s30  ;;  %v96_v15 = vstv %s954_s4  ;;  %s998_s21 = sld [smem:[#allocation7 + $0x4]]  ;;  %s1008_s24 = sld [smem:[#allocation7 + $0x5]] }
  0x39   :  { %v84_v11 = vstv %s83_s8  ;;  %vm81_vm0 = vcmp.ge.f32.partialorder %v967_v5, %v80_v10  ;;  %vm82_vm1 = vcmp.ge.f32.partialorder %v972_v6, %v80_v10  ;;  %s1000_s22 = sld [smem:[#allocation9 + $0x4]]  ;;  %vm97_vm2 = vcmp.ge.f32.partialorder %v967_v5, %v96_v15  ;;  %s1026_s25 = sld [smem:[#allocation9 + $0x5]] }
  0x3a   :  { %v90_v14 = vstv %s89_s9  ;;  %v85_v16 = vsel %vm81_vm0, %v84_v11, 0.0  ;;  %v86_v17 = vsel %vm82_vm1, %v84_v11, 0.0  ;;  %vm98_vm3 = vcmp.ge.f32.partialorder %v972_v6, %v96_v15  ;;  %s1006_s23 = sld [smem:[#allocation10 + $0x4]]  ;;  %s1028_s26 = sld [smem:[#allocation10 + $0x5]] }
  0x3b   :  { %v91_v18 = vsel %vm81_vm0, %v90_v14, 0.0  ;;  %v92_v19 = vsel %vm82_vm1, %v90_v14, 0.0  ;;  %v87_v20 = vadd.f32 %v85_v16, %v76_v7  ;;  %v88_v21 = vadd.f32 %v86_v17, %v76_v7  ;;  %s1030_s27 = sld [smem:[#allocation7 + $0x6]]  ;;  %s1048_s29 = sld [smem:[#allocation7 + $0x7]] }
  0x3c   :  { %v93_v22 = vadd.f32 %v91_v18, %v78_v8  ;;  %v94_v23 = vadd.f32 %v92_v19, %v78_v8  ;;  %v100_v24 = vstv %s956_s1  ;;  %v106_v25 = vstv %s958_s2  ;;  %s1036_s28 = sld [smem:[#allocation9 + $0x6]]  ;;  %s1054_s30 = sld [smem:[#allocation9 + $0x7]] }
  0x3d   :  { %v101_v26 = vsel %vm97_vm2, %v100_v24, 0.0  ;;  %v102_v27 = vsel %vm98_vm3, %v100_v24, 0.0  ;;  %v107_v28 = vsel %vm97_vm2, %v106_v25, 0.0  ;;  %v108_v29 = vsel %vm98_vm3, %v106_v25, 0.0  ;;  %s1038_s3 = sld [smem:[#allocation10 + $0x6]]  ;;  %s1056_s8 = sld [smem:[#allocation10 + $0x7]] }
  0x3e   :  { %v103_v30 = vadd.f32 %v101_v26, %v87_v20  ;;  %v104_v31 = vadd.f32 %v102_v27, %v88_v21  ;;  %v109_v32 = vadd.f32 %v107_v28, %v93_v22  ;;  %v110_v33 = vadd.f32 %v108_v29, %v94_v23  ;;  %s1058_s9 = sld [smem:[#allocation7 + $0x8]]  ;;  %s1068_s2 = sld [smem:[#allocation7 + $0x9]] }
  0x3f   :  { %v112_v34 = vstv %s974_s14  ;;  %v116_v35 = vstv %s976_s15  ;;  %v122_v36 = vstv %s980_s16  ;;  %v128_v37 = vstv %s982_s17  ;;  %s1060_s4 = sld [smem:[#allocation9 + $0x8]]  ;;  %s1086_s10 = sld [smem:[#allocation9 + $0x9]] }
  0x40   :  { %vm113_vm4 = vcmp.ge.f32.partialorder %v967_v5, %v112_v34  ;;  %vm114_vm5 = vcmp.ge.f32.partialorder %v972_v6, %v112_v34  ;;  %vm1017_vm6 = vcmp.ge.f32.partialorder %v967_v5, %v128_v37  ;;  %vm1022_vm7 = vcmp.ge.f32.partialorder %v972_v6, %v128_v37  ;;  %s1066_s1 = sld [smem:[#allocation10 + $0x8]]  ;;  %s1088_s11 = sld [smem:[#allocation10 + $0x9]] }
  0x41   :  { %v117_v40 = vsel %vm113_vm4, %v116_v35, 0.0  ;;  %v118_v41 = vsel %vm114_vm5, %v116_v35, 0.0  ;;  %v123_v42 = vsel %vm113_vm4, %v122_v36, 0.0  ;;  %v124_v43 = vsel %vm114_vm5, %v122_v36, 0.0  ;;  %s1090_s12 = sld [smem:[#allocation7 + $0xa]]  ;;  %s1108_s15 = sld [smem:[#allocation7 + $0xb]] }
  0x42   :  { %v119_v44 = vadd.f32 %v117_v40, %v103_v30  ;;  %v120_v45 = vadd.f32 %v118_v41, %v104_v31  ;;  %v125_v46 = vadd.f32 %v123_v42, %v109_v32  ;;  %v126_v47 = vadd.f32 %v124_v43, %v110_v33  ;;  %s1096_s13 = sld [smem:[#allocation9 + $0xa]]  ;;  %s1114_s16 = sld [smem:[#allocation9 + $0xb]] }
  0x43   :  { %v132_v48 = vstv %s994_s5  ;;  %v138_v49 = vstv %s996_s20  ;;  %v144_v50 = vstv %s998_s21  ;;  %v148_v51 = vstv %s1000_s22  ;;  %s1098_s14 = sld [smem:[#allocation10 + $0xa]]  ;;  %s1116_s17 = sld [smem:[#allocation10 + $0xb]] }
  0x44   :  { %v133_v52 = vsel %vm1017_vm6, %v132_v48, 0.0  ;;  %v134_v53 = vsel %vm1022_vm7, %v132_v48, 0.0  ;;  %v139_v54 = vsel %vm1017_vm6, %v138_v49, 0.0  ;;  %v140_v55 = vsel %vm1022_vm7, %v138_v49, 0.0  ;;  %s1118_s18 = sld [smem:[#allocation7 + $0xc]]  ;;  %s1128_s20 = sld [smem:[#allocation7 + $0xd]] }
  0x45   :  { %v135_v56 = vadd.f32 %v133_v52, %v119_v44  ;;  %v136_v57 = vadd.f32 %v134_v53, %v120_v45  ;;  %v141_v58 = vadd.f32 %v139_v54, %v125_v46  ;;  %v142_v59 = vadd.f32 %v140_v55, %v126_v47  ;;  %s1120_s19 = sld [smem:[#allocation9 + $0xc]]  ;;  %s1146_s21 = sld [smem:[#allocation9 + $0xd]] }
  0x46   :  { %vm145_vm8 = vcmp.ge.f32.partialorder %v967_v5, %v144_v50  ;;  %vm146_vm9 = vcmp.ge.f32.partialorder %v972_v6, %v144_v50  ;;  %v154_v60 = vstv %s1006_s23  ;;  %v160_v61 = vstv %s1008_s24  ;;  %s1126_s5 = sld [smem:[#allocation10 + $0xc]]  ;;  %s1148_s22 = sld [smem:[#allocation10 + $0xd]] }
  0x47   :  { %v149_v62 = vsel %vm145_vm8, %v148_v51, 0.0  ;;  %v150_v63 = vsel %vm146_vm9, %v148_v51, 0.0  ;;  %v155_v0 = vsel %vm145_vm8, %v154_v60, 0.0  ;;  %v156_v1 = vsel %vm146_vm9, %v154_v60, 0.0  ;;  %s1150_s23 = sld [smem:[#allocation7 + $0xe]] }
  0x48   :  { %v151_v4 = vadd.f32 %v149_v62, %v135_v56  ;;  %v152_v7 = vadd.f32 %v150_v63, %v136_v57  ;;  %v157_v8 = vadd.f32 %v155_v0, %v141_v58  ;;  %v158_v10 = vadd.f32 %v156_v1, %v142_v59  ;;  %s1156_s24 = sld [smem:[#allocation9 + $0xe]] }
  0x49   :  { %vm161_vm10 = vcmp.ge.f32.partialorder %v967_v5, %v160_v61  ;;  %vm162_vm11 = vcmp.ge.f32.partialorder %v972_v6, %v160_v61  ;;  %v164_v11 = vstv %s1026_s25  ;;  %v170_v14 = vstv %s1028_s26  ;;  %s1158_s25 = sld [smem:[#allocation10 + $0xe]]  ;;  %s1168_s26 = sld [smem:[#allocation7 + $0xf]] }
  0x4a   :  { %v165_v15 = vsel %vm161_vm10, %v164_v11, 0.0  ;;  %v166_v16 = vsel %vm162_vm11, %v164_v11, 0.0  ;;  %v171_v17 = vsel %vm161_vm10, %v170_v14, 0.0  ;;  %v172_v18 = vsel %vm162_vm11, %v170_v14, 0.0 }
  0x4b   :  { %v167_v19 = vadd.f32 %v165_v15, %v151_v4  ;;  %v168_v20 = vadd.f32 %v166_v16, %v152_v7  ;;  %v173_v21 = vadd.f32 %v171_v17, %v157_v8  ;;  %v174_v22 = vadd.f32 %v172_v18, %v158_v10 }
  0x4c   :  { %v176_v23 = vstv %s1030_s27  ;;  %v180_v24 = vstv %s1036_s28  ;;  %v186_v25 = vstv %s1038_s3  ;;  %v192_v26 = vstv %s1048_s29  ;;  %s1174_s27 = sld [smem:[#allocation9 + $0xf]]  ;;  %s1178_s3 = sld [smem:[#allocation7 + $0x10]] }
  0x4d   :  { %vm177_vm12 = vcmp.ge.f32.partialorder %v967_v5, %v176_v23  ;;  %vm178_vm13 = vcmp.ge.f32.partialorder %v972_v6, %v176_v23  ;;  %vm1077_vm14 = vcmp.ge.f32.partialorder %v967_v5, %v192_v26  ;;  %vm1082_vm15 = vcmp.ge.f32.partialorder %v972_v6, %v192_v26  ;;  %s1176_s28 = sld [smem:[#allocation10 + $0xf]]  ;;  %s1180_s29 = sld [smem:[#allocation9 + $0x10]] }
  0x4e   :  { %v181_v29 = vsel %vm177_vm12, %v180_v24, 0.0  ;;  %v182_v30 = vsel %vm178_vm13, %v180_v24, 0.0  ;;  %v187_v31 = vsel %vm177_vm12, %v186_v25, 0.0  ;;  %v188_v32 = vsel %vm178_vm13, %v186_v25, 0.0 }
  0x4f   :  { %v183_v33 = vadd.f32 %v181_v29, %v167_v19  ;;  %v184_v34 = vadd.f32 %v182_v30, %v168_v20  ;;  %v189_v35 = vadd.f32 %v187_v31, %v173_v21  ;;  %v190_v36 = vadd.f32 %v188_v32, %v174_v22 }
  0x50   :  { %v196_v37 = vstv %s1054_s30  ;;  %v202_v38 = vstv %s1056_s8  ;;  %v208_v39 = vstv %s1058_s9  ;;  %v212_v40 = vstv %s1060_s4  ;;  %s1186_s30 = sld [smem:[#allocation10 + $0x10]]  ;;  %s1188_s8 = sld [smem:[#allocation7 + $0x11]] }
  0x51   :  { %v197_v41 = vsel %vm1077_vm14, %v196_v37, 0.0  ;;  %v198_v42 = vsel %vm1082_vm15, %v196_v37, 0.0  ;;  %v203_v43 = vsel %vm1077_vm14, %v202_v38, 0.0  ;;  %v204_v44 = vsel %vm1082_vm15, %v202_v38, 0.0  ;;  %s1206_s9 = sld [smem:[#allocation9 + $0x11]] }
  0x52   :  { %v199_v45 = vadd.f32 %v197_v41, %v183_v33  ;;  %v200_v46 = vadd.f32 %v198_v42, %v184_v34  ;;  %v205_v47 = vadd.f32 %v203_v43, %v189_v35  ;;  %v206_v48 = vadd.f32 %v204_v44, %v190_v36  ;;  %s1208_s4 = sld [smem:[#allocation10 + $0x11]] }
  0x53   :  { %vm209_vm0 = vcmp.ge.f32.partialorder %v967_v5, %v208_v39  ;;  %vm210_vm1 = vcmp.ge.f32.partialorder %v972_v6, %v208_v39  ;;  %v218_v49 = vstv %s1066_s1  ;;  %v224_v50 = vstv %s1068_s2  ;;  %s1210_s1 = sld [smem:[#allocation7 + $0x12]] }
  0x54   :  { %v213_v51 = vsel %vm209_vm0, %v212_v40, 0.0  ;;  %v214_v52 = vsel %vm210_vm1, %v212_v40, 0.0  ;;  %v219_v53 = vsel %vm209_vm0, %v218_v49, 0.0  ;;  %v220_v54 = vsel %vm210_vm1, %v218_v49, 0.0  ;;  %s1216_s2 = sld [smem:[#allocation9 + $0x12]] }
  0x55   :  { %v215_v55 = vadd.f32 %v213_v51, %v199_v45  ;;  %v216_v56 = vadd.f32 %v214_v52, %v200_v46  ;;  %v221_v57 = vadd.f32 %v219_v53, %v205_v47  ;;  %v222_v58 = vadd.f32 %v220_v54, %v206_v48 }
  0x56   :  { %vm225_vm2 = vcmp.ge.f32.partialorder %v967_v5, %v224_v50  ;;  %vm226_vm3 = vcmp.ge.f32.partialorder %v972_v6, %v224_v50  ;;  %v228_v59 = vstv %s1086_s10  ;;  %v234_v60 = vstv %s1088_s11  ;;  %s1218_s10 = sld [smem:[#allocation10 + $0x12]]  ;;  %s1228_s11 = sld [smem:[#allocation7 + $0x13]] }
  0x57   :  { %v229_v61 = vsel %vm225_vm2, %v228_v59, 0.0  ;;  %v230_v62 = vsel %vm226_vm3, %v228_v59, 0.0  ;;  %v235_v63 = vsel %vm225_vm2, %v234_v60, 0.0  ;;  %v236_v0 = vsel %vm226_vm3, %v234_v60, 0.0 }
  0x58   :  { %v231_v1 = vadd.f32 %v229_v61, %v215_v55  ;;  %v232_v4 = vadd.f32 %v230_v62, %v216_v56  ;;  %v237_v7 = vadd.f32 %v235_v63, %v221_v57  ;;  %v238_v8 = vadd.f32 %v236_v0, %v222_v58 }
  0x59   :  { %v240_v10 = vstv %s1090_s12  ;;  %v244_v11 = vstv %s1096_s13  ;;  %v250_v14 = vstv %s1098_s14  ;;  %v256_v15 = vstv %s1108_s15  ;;  %s1234_s12 = sld [smem:[#allocation9 + $0x13]]  ;;  %s1238_s14 = sld [smem:[#allocation7 + $0x14]] }
  0x5a   :  { %vm241_vm4 = vcmp.ge.f32.partialorder %v967_v5, %v240_v10  ;;  %vm242_vm5 = vcmp.ge.f32.partialorder %v972_v6, %v240_v10  ;;  %vm1137_vm6 = vcmp.ge.f32.partialorder %v967_v5, %v256_v15  ;;  %vm1142_vm7 = vcmp.ge.f32.partialorder %v972_v6, %v256_v15  ;;  %s1236_s13 = sld [smem:[#allocation10 + $0x13]]  ;;  %s1240_s15 = sld [smem:[#allocation9 + $0x14]] }
  0x5b   :  { %v245_v18 = vsel %vm241_vm4, %v244_v11, 0.0  ;;  %v246_v19 = vsel %vm242_vm5, %v244_v11, 0.0  ;;  %v251_v20 = vsel %vm241_vm4, %v250_v14, 0.0  ;;  %v252_v21 = vsel %vm242_vm5, %v250_v14, 0.0 }
  0x5c   :  { %v247_v22 = vadd.f32 %v245_v18, %v231_v1  ;;  %v248_v23 = vadd.f32 %v246_v19, %v232_v4  ;;  %v253_v24 = vadd.f32 %v251_v20, %v237_v7  ;;  %v254_v25 = vadd.f32 %v252_v21, %v238_v8 }
  0x5d   :  { %v260_v26 = vstv %s1114_s16  ;;  %v266_v27 = vstv %s1116_s17  ;;  %v272_v28 = vstv %s1118_s18  ;;  %v276_v29 = vstv %s1120_s19  ;;  %s1246_s16 = sld [smem:[#allocation10 + $0x14]]  ;;  %s1248_s17 = sld [smem:[#allocation7 + $0x15]] }
  0x5e   :  { %v261_v30 = vsel %vm1137_vm6, %v260_v26, 0.0  ;;  %v262_v31 = vsel %vm1142_vm7, %v260_v26, 0.0  ;;  %v267_v32 = vsel %vm1137_vm6, %v266_v27, 0.0  ;;  %v268_v33 = vsel %vm1142_vm7, %v266_v27, 0.0  ;;  %s1266_s18 = sld [smem:[#allocation9 + $0x15]] }
  0x5f   :  { %v263_v34 = vadd.f32 %v261_v30, %v247_v22  ;;  %v264_v35 = vadd.f32 %v262_v31, %v248_v23  ;;  %v269_v36 = vadd.f32 %v267_v32, %v253_v24  ;;  %v270_v37 = vadd.f32 %v268_v33, %v254_v25  ;;  %s1268_s19 = sld [smem:[#allocation10 + $0x15]] }
  0x60   :  { %vm273_vm8 = vcmp.ge.f32.partialorder %v967_v5, %v272_v28  ;;  %vm274_vm9 = vcmp.ge.f32.partialorder %v972_v6, %v272_v28  ;;  %v282_v38 = vstv %s1126_s5  ;;  %v288_v39 = vstv %s1128_s20  ;;  %s1270_s5 = sld [smem:[#allocation7 + $0x16]] }
  0x61   :  { %v277_v40 = vsel %vm273_vm8, %v276_v29, 0.0  ;;  %v278_v41 = vsel %vm274_vm9, %v276_v29, 0.0  ;;  %v283_v42 = vsel %vm273_vm8, %v282_v38, 0.0  ;;  %v284_v43 = vsel %vm274_vm9, %v282_v38, 0.0  ;;  %s1276_s20 = sld [smem:[#allocation9 + $0x16]] }
  0x62   :  { %v279_v44 = vadd.f32 %v277_v40, %v263_v34  ;;  %v280_v45 = vadd.f32 %v278_v41, %v264_v35  ;;  %v285_v46 = vadd.f32 %v283_v42, %v269_v36  ;;  %v286_v47 = vadd.f32 %v284_v43, %v270_v37 }
  0x63   :  { %vm289_vm10 = vcmp.ge.f32.partialorder %v967_v5, %v288_v39  ;;  %vm290_vm11 = vcmp.ge.f32.partialorder %v972_v6, %v288_v39  ;;  %v292_v48 = vstv %s1146_s21  ;;  %v298_v49 = vstv %s1148_s22  ;;  %s1278_s21 = sld [smem:[#allocation10 + $0x16]]  ;;  %s1288_s22 = sld [smem:[#allocation7 + $0x17]] }
  0x64   :  { %v293_v50 = vsel %vm289_vm10, %v292_v48, 0.0  ;;  %v294_v51 = vsel %vm290_vm11, %v292_v48, 0.0  ;;  %v299_v52 = vsel %vm289_vm10, %v298_v49, 0.0  ;;  %v300_v53 = vsel %vm290_vm11, %v298_v49, 0.0 }
  0x65   :  { %v295_v54 = vadd.f32 %v293_v50, %v279_v44  ;;  %v296_v55 = vadd.f32 %v294_v51, %v280_v45  ;;  %v301_v56 = vadd.f32 %v299_v52, %v285_v46  ;;  %v302_v57 = vadd.f32 %v300_v53, %v286_v47 }
  0x66   :  { %v304_v58 = vstv %s1150_s23  ;;  %v308_v59 = vstv %s1156_s24  ;;  %v314_v60 = vstv %s1158_s25  ;;  %v320_v61 = vstv %s1168_s26  ;;  %s1294_s23 = sld [smem:[#allocation9 + $0x17]]  ;;  %s1298_s25 = sld [smem:[#allocation7 + $0x18]] }
  0x67   :  { %vm305_vm12 = vcmp.ge.f32.partialorder %v967_v5, %v304_v58  ;;  %vm306_vm13 = vcmp.ge.f32.partialorder %v972_v6, %v304_v58  ;;  %vm1197_vm14 = vcmp.ge.f32.partialorder %v967_v5, %v320_v61  ;;  %vm1202_vm15 = vcmp.ge.f32.partialorder %v972_v6, %v320_v61  ;;  %s1296_s24 = sld [smem:[#allocation10 + $0x17]]  ;;  %s1300_s26 = sld [smem:[#allocation9 + $0x18]] }
  0x68   :  { %v309_v0 = vsel %vm305_vm12, %v308_v59, 0.0  ;;  %v310_v1 = vsel %vm306_vm13, %v308_v59, 0.0  ;;  %v315_v4 = vsel %vm305_vm12, %v314_v60, 0.0  ;;  %v316_v7 = vsel %vm306_vm13, %v314_v60, 0.0 }
  0x69   :  { %v311_v8 = vadd.f32 %v309_v0, %v295_v54  ;;  %v312_v10 = vadd.f32 %v310_v1, %v296_v55  ;;  %v317_v11 = vadd.f32 %v315_v4, %v301_v56  ;;  %v318_v14 = vadd.f32 %v316_v7, %v302_v57 }
  0x6a   :  { %v324_v15 = vstv %s1174_s27  ;;  %v330_v16 = vstv %s1176_s28  ;;  %v336_v17 = vstv %s1178_s3  ;;  %v340_v18 = vstv %s1180_s29  ;;  %s1306_s27 = sld [smem:[#allocation10 + $0x18]]  ;;  %s1308_s28 = sld [smem:[#allocation7 + $0x19]] }
  0x6b   :  { %v325_v19 = vsel %vm1197_vm14, %v324_v15, 0.0  ;;  %v326_v20 = vsel %vm1202_vm15, %v324_v15, 0.0  ;;  %v331_v21 = vsel %vm1197_vm14, %v330_v16, 0.0  ;;  %v332_v22 = vsel %vm1202_vm15, %v330_v16, 0.0  ;;  %s1326_s3 = sld [smem:[#allocation9 + $0x19]] }
  0x6c   :  { %v327_v23 = vadd.f32 %v325_v19, %v311_v8  ;;  %v328_v24 = vadd.f32 %v326_v20, %v312_v10  ;;  %v333_v25 = vadd.f32 %v331_v21, %v317_v11  ;;  %v334_v26 = vadd.f32 %v332_v22, %v318_v14  ;;  %s1328_s29 = sld [smem:[#allocation10 + $0x19]] }
  0x6d   :  { %vm337_vm0 = vcmp.ge.f32.partialorder %v967_v5, %v336_v17  ;;  %vm338_vm1 = vcmp.ge.f32.partialorder %v972_v6, %v336_v17  ;;  %v346_v27 = vstv %s1186_s30  ;;  %v352_v28 = vstv %s1188_s8  ;;  %s1330_s30 = sld [smem:[#allocation7 + $0x1a]] }
  0x6e   :  { %v341_v29 = vsel %vm337_vm0, %v340_v18, 0.0  ;;  %v342_v30 = vsel %vm338_vm1, %v340_v18, 0.0  ;;  %v347_v31 = vsel %vm337_vm0, %v346_v27, 0.0  ;;  %v348_v32 = vsel %vm338_vm1, %v346_v27, 0.0  ;;  %s1336_s8 = sld [smem:[#allocation9 + $0x1a]] }
  0x6f   :  { %v343_v33 = vadd.f32 %v341_v29, %v327_v23  ;;  %v344_v34 = vadd.f32 %v342_v30, %v328_v24  ;;  %v349_v35 = vadd.f32 %v347_v31, %v333_v25  ;;  %v350_v36 = vadd.f32 %v348_v32, %v334_v26 }
  0x70   :  { %vm353_vm2 = vcmp.ge.f32.partialorder %v967_v5, %v352_v28  ;;  %vm354_vm3 = vcmp.ge.f32.partialorder %v972_v6, %v352_v28  ;;  %v356_v37 = vstv %s1206_s9  ;;  %v362_v38 = vstv %s1208_s4  ;;  %s1338_s9 = sld [smem:[#allocation10 + $0x1a]]  ;;  %s1348_s4 = sld [smem:[#allocation7 + $0x1b]] }
  0x71   :  { %v357_v39 = vsel %vm353_vm2, %v356_v37, 0.0  ;;  %v358_v40 = vsel %vm354_vm3, %v356_v37, 0.0  ;;  %v363_v41 = vsel %vm353_vm2, %v362_v38, 0.0  ;;  %v364_v42 = vsel %vm354_vm3, %v362_v38, 0.0 }
  0x72   :  { %v359_v43 = vadd.f32 %v357_v39, %v343_v33  ;;  %v360_v44 = vadd.f32 %v358_v40, %v344_v34  ;;  %v365_v45 = vadd.f32 %v363_v41, %v349_v35  ;;  %v366_v46 = vadd.f32 %v364_v42, %v350_v36 }
  0x73   :  { %v368_v47 = vstv %s1210_s1  ;;  %v372_v48 = vstv %s1216_s2  ;;  %v378_v49 = vstv %s1218_s10  ;;  %v384_v50 = vstv %s1228_s11  ;;  %s1354_s1 = sld [smem:[#allocation9 + $0x1b]]  ;;  %s1358_s10 = sld [smem:[#allocation7 + $0x1c]] }
  0x74   :  { %vm369_vm4 = vcmp.ge.f32.partialorder %v967_v5, %v368_v47  ;;  %vm370_vm5 = vcmp.ge.f32.partialorder %v972_v6, %v368_v47  ;;  %vm1257_vm6 = vcmp.ge.f32.partialorder %v967_v5, %v384_v50  ;;  %vm1262_vm7 = vcmp.ge.f32.partialorder %v972_v6, %v384_v50  ;;  %s1356_s2 = sld [smem:[#allocation10 + $0x1b]]  ;;  %s1360_s11 = sld [smem:[#allocation9 + $0x1c]] }
  0x75   :  { %v373_v53 = vsel %vm369_vm4, %v372_v48, 0.0  ;;  %v374_v54 = vsel %vm370_vm5, %v372_v48, 0.0  ;;  %v379_v55 = vsel %vm369_vm4, %v378_v49, 0.0  ;;  %v380_v56 = vsel %vm370_vm5, %v378_v49, 0.0 }
  0x76   :  { %v375_v57 = vadd.f32 %v373_v53, %v359_v43  ;;  %v376_v58 = vadd.f32 %v374_v54, %v360_v44  ;;  %v381_v59 = vadd.f32 %v379_v55, %v365_v45  ;;  %v382_v60 = vadd.f32 %v380_v56, %v366_v46 }
  0x77   :  { %v388_v61 = vstv %s1234_s12  ;;  %v394_v62 = vstv %s1236_s13  ;;  %v400_v63 = vstv %s1238_s14  ;;  %v404_v0 = vstv %s1240_s15  ;;  %s1366_s12 = sld [smem:[#allocation10 + $0x1c]]  ;;  %s1368_s13 = sld [smem:[#allocation7 + $0x1d]] }
  0x78   :  { %v389_v1 = vsel %vm1257_vm6, %v388_v61, 0.0  ;;  %v390_v4 = vsel %vm1262_vm7, %v388_v61, 0.0  ;;  %v395_v7 = vsel %vm1257_vm6, %v394_v62, 0.0  ;;  %v396_v8 = vsel %vm1262_vm7, %v394_v62, 0.0  ;;  %s1386_s14 = sld [smem:[#allocation9 + $0x1d]] }
  0x79   :  { %v391_v10 = vadd.f32 %v389_v1, %v375_v57  ;;  %v392_v11 = vadd.f32 %v390_v4, %v376_v58  ;;  %v397_v14 = vadd.f32 %v395_v7, %v381_v59  ;;  %v398_v15 = vadd.f32 %v396_v8, %v382_v60  ;;  %s1388_s15 = sld [smem:[#allocation10 + $0x1d]] }
  0x7a   :  { %vm401_vm8 = vcmp.ge.f32.partialorder %v967_v5, %v400_v63  ;;  %vm402_vm9 = vcmp.ge.f32.partialorder %v972_v6, %v400_v63  ;;  %v410_v16 = vstv %s1246_s16  ;;  %v416_v17 = vstv %s1248_s17  ;;  %s1390_s16 = sld [smem:[#allocation7 + $0x1e]] }
  0x7b   :  { %v405_v18 = vsel %vm401_vm8, %v404_v0, 0.0  ;;  %v406_v19 = vsel %vm402_vm9, %v404_v0, 0.0  ;;  %v411_v20 = vsel %vm401_vm8, %v410_v16, 0.0  ;;  %v412_v21 = vsel %vm402_vm9, %v410_v16, 0.0  ;;  %s1396_s17 = sld [smem:[#allocation9 + $0x1e]] }
  0x7c   :  { %v407_v22 = vadd.f32 %v405_v18, %v391_v10  ;;  %v408_v23 = vadd.f32 %v406_v19, %v392_v11  ;;  %v413_v24 = vadd.f32 %v411_v20, %v397_v14  ;;  %v414_v25 = vadd.f32 %v412_v21, %v398_v15 }
  0x7d   :  { %vm417_vm10 = vcmp.ge.f32.partialorder %v967_v5, %v416_v17  ;;  %vm418_vm11 = vcmp.ge.f32.partialorder %v972_v6, %v416_v17  ;;  %v420_v26 = vstv %s1266_s18  ;;  %v426_v27 = vstv %s1268_s19  ;;  %s1398_s18 = sld [smem:[#allocation10 + $0x1e]]  ;;  %s1408_s19 = sld [smem:[#allocation7 + $0x1f]] }
  0x7e   :  { %v421_v28 = vsel %vm417_vm10, %v420_v26, 0.0  ;;  %v422_v29 = vsel %vm418_vm11, %v420_v26, 0.0  ;;  %v427_v30 = vsel %vm417_vm10, %v426_v27, 0.0  ;;  %v428_v31 = vsel %vm418_vm11, %v426_v27, 0.0 }
  0x7f   :  { %v423_v32 = vadd.f32 %v421_v28, %v407_v22  ;;  %v424_v33 = vadd.f32 %v422_v29, %v408_v23  ;;  %v429_v34 = vadd.f32 %v427_v30, %v413_v24  ;;  %v430_v35 = vadd.f32 %v428_v31, %v414_v25 }
  0x80   :  { %v432_v36 = vstv %s1270_s5  ;;  %v436_v37 = vstv %s1276_s20  ;;  %v442_v38 = vstv %s1278_s21  ;;  %v448_v39 = vstv %s1288_s22  ;;  %s1414_s5 = sld [smem:[#allocation9 + $0x1f]]  ;;  %s876_s21 = smov [#allocation12]  }
  0x81   :  { %vm433_vm12 = vcmp.ge.f32.partialorder %v967_v5, %v432_v36  ;;  %vm434_vm13 = vcmp.ge.f32.partialorder %v972_v6, %v432_v36  ;;  %vm1317_vm14 = vcmp.ge.f32.partialorder %v967_v5, %v448_v39  ;;  %vm1322_vm15 = vcmp.ge.f32.partialorder %v972_v6, %v448_v39  ;;  %s1416_s20 = sld [smem:[#allocation10 + $0x1f]]  ;;  %s641_s22 = sshll.u32 %s876_s21, 4  ;;  %s642_s22 = int_to_ptr.vmem [resolvable:$true] %s641_s22 }
  0x82   :  { %v437_v42 = vsel %vm433_vm12, %v436_v37, 0.0  ;;  %v438_v43 = vsel %vm434_vm13, %v436_v37, 0.0  ;;  %v443_v44 = vsel %vm433_vm12, %v442_v38, 0.0  ;;  %v444_v45 = vsel %vm434_vm13, %v442_v38, 0.0  ;;  %p821_p3 = scmp.lt.s32.totalorder %s642_s22, %s642_s22 }
  0x83   :  { %v439_v46 = vadd.f32 %v437_v42, %v423_v32  ;;  %v440_v47 = vadd.f32 %v438_v43, %v424_v33  ;;  %v445_v48 = vadd.f32 %v443_v44, %v429_v34  ;;  %v446_v49 = vadd.f32 %v444_v45, %v430_v35 }
  0x84   :  { %v452_v50 = vstv %s1294_s23  ;;  %v458_v51 = vstv %s1296_s24  ;;  %v464_v52 = vstv %s1298_s25  ;;  %v468_v53 = vstv %s1300_s26 }
  0x85   :  { %v453_v54 = vsel %vm1317_vm14, %v452_v50, 0.0  ;;  %v454_v55 = vsel %vm1322_vm15, %v452_v50, 0.0  ;;  %v459_v56 = vsel %vm1317_vm14, %v458_v51, 0.0  ;;  %v460_v57 = vsel %vm1322_vm15, %v458_v51, 0.0 }
  0x86   :  { %v455_v58 = vadd.f32 %v453_v54, %v439_v46  ;;  %v456_v59 = vadd.f32 %v454_v55, %v440_v47  ;;  %v461_v60 = vadd.f32 %v459_v56, %v445_v48  ;;  %v462_v61 = vadd.f32 %v460_v57, %v446_v49 }
  0x87   :  { %vm465_vm0 = vcmp.ge.f32.partialorder %v967_v5, %v464_v52  ;;  %vm466_vm1 = vcmp.ge.f32.partialorder %v972_v6, %v464_v52  ;;  %v474_v62 = vstv %s1306_s27  ;;  %v480_v63 = vstv %s1308_s28  ;;  %s816_s27 = scalar_lea.vmem %s642_s22, 256 }
  0x88   :  { %v469_v0 = vsel %vm465_vm0, %v468_v53, 0.0  ;;  %v470_v1 = vsel %vm466_vm1, %v468_v53, 0.0  ;;  %v475_v4 = vsel %vm465_vm0, %v474_v62, 0.0  ;;  %v476_v7 = vsel %vm466_vm1, %v474_v62, 0.0  ;;  %p817_p2 = scmp.ne.s32.totalorder %s642_s22, %s816_s27  ;;  %p822_p4 = scmp.lt.s32.totalorder %s816_s27, %s816_s27 }
  0x89   :  { %v471_v8 = vadd.f32 %v469_v0, %v455_v58  ;;  %v472_v10 = vadd.f32 %v470_v1, %v456_v59  ;;  %v477_v11 = vadd.f32 %v475_v4, %v461_v60  ;;  %v478_v14 = vadd.f32 %v476_v7, %v462_v61 }
  0x8a   :  { %vm481_vm2 = vcmp.ge.f32.partialorder %v967_v5, %v480_v63  ;;  %vm482_vm3 = vcmp.ge.f32.partialorder %v972_v6, %v480_v63  ;;  %v484_v15 = vstv %s1326_s3  ;;  %v490_v16 = vstv %s1328_s29  ;;  %p823_p5 = por %p822_p4, %p821_p3 }
  0x8b   :  { %v485_v17 = vsel %vm481_vm2, %v484_v15, 0.0  ;;  %v486_v18 = vsel %vm482_vm3, %v484_v15, 0.0  ;;  %v491_v19 = vsel %vm481_vm2, %v490_v16, 0.0  ;;  %v492_v20 = vsel %vm482_vm3, %v490_v16, 0.0 }
  0x8c   :  { %v487_v21 = vadd.f32 %v485_v17, %v471_v8  ;;  %v488_v22 = vadd.f32 %v486_v18, %v472_v10  ;;  %v493_v23 = vadd.f32 %v491_v19, %v477_v11  ;;  %v494_v24 = vadd.f32 %v492_v20, %v478_v14  ;;  %p824_p6 = pnand %p823_p5, %p817_p2 }
  0x8d   :  { %v496_v25 = vstv %s1330_s30  ;;  %v500_v26 = vstv %s1336_s8  ;;  %v506_v27 = vstv %s1338_s9  ;;  %v512_v28 = vstv %s1348_s4 }
  0x8e   :  { %vm497_vm4 = vcmp.ge.f32.partialorder %v967_v5, %v496_v25  ;;  %vm498_vm5 = vcmp.ge.f32.partialorder %v972_v6, %v496_v25  ;;  %vm1377_vm6 = vcmp.ge.f32.partialorder %v967_v5, %v512_v28  ;;  %vm1382_vm7 = vcmp.ge.f32.partialorder %v972_v6, %v512_v28 }
  0x8f   :  { %v501_v31 = vsel %vm497_vm4, %v500_v26, 0.0  ;;  %v502_v32 = vsel %vm498_vm5, %v500_v26, 0.0  ;;  %v507_v33 = vsel %vm497_vm4, %v506_v27, 0.0  ;;  %v508_v34 = vsel %vm498_vm5, %v506_v27, 0.0 }
  0x90   :  { %v503_v35 = vadd.f32 %v501_v31, %v487_v21  ;;  %v504_v36 = vadd.f32 %v502_v32, %v488_v22  ;;  %v509_v37 = vadd.f32 %v507_v33, %v493_v23  ;;  %v510_v38 = vadd.f32 %v508_v34, %v494_v24 }
  0x91   :  { %v516_v39 = vstv %s1354_s1  ;;  %v522_v40 = vstv %s1356_s2  ;;  %v528_v41 = vstv %s1358_s10  ;;  %v532_v42 = vstv %s1360_s11 }
  0x92   :  { %v517_v43 = vsel %vm1377_vm6, %v516_v39, 0.0  ;;  %v518_v44 = vsel %vm1382_vm7, %v516_v39, 0.0  ;;  %v523_v45 = vsel %vm1377_vm6, %v522_v40, 0.0  ;;  %v524_v46 = vsel %vm1382_vm7, %v522_v40, 0.0 }
  0x93   :  { %v519_v47 = vadd.f32 %v517_v43, %v503_v35  ;;  %v520_v48 = vadd.f32 %v518_v44, %v504_v36  ;;  %v525_v49 = vadd.f32 %v523_v45, %v509_v37  ;;  %v526_v50 = vadd.f32 %v524_v46, %v510_v38 }
  0x94   :  { %vm529_vm8 = vcmp.ge.f32.partialorder %v967_v5, %v528_v41  ;;  %vm530_vm9 = vcmp.ge.f32.partialorder %v972_v6, %v528_v41  ;;  %v538_v51 = vstv %s1366_s12  ;;  %v544_v52 = vstv %s1368_s13 }
  0x95   :  { %v533_v53 = vsel %vm529_vm8, %v532_v42, 0.0  ;;  %v534_v54 = vsel %vm530_vm9, %v532_v42, 0.0  ;;  %v539_v55 = vsel %vm529_vm8, %v538_v51, 0.0  ;;  %v540_v56 = vsel %vm530_vm9, %v538_v51, 0.0 }
  0x96   :  { %v535_v57 = vadd.f32 %v533_v53, %v519_v47  ;;  %v536_v58 = vadd.f32 %v534_v54, %v520_v48  ;;  %v541_v59 = vadd.f32 %v539_v55, %v525_v49  ;;  %v542_v60 = vadd.f32 %v540_v56, %v526_v50 }
  0x97   :  { %vm545_vm10 = vcmp.ge.f32.partialorder %v967_v5, %v544_v52  ;;  %vm546_vm11 = vcmp.ge.f32.partialorder %v972_v6, %v544_v52  ;;  %v548_v61 = vstv %s1386_s14  ;;  %v554_v62 = vstv %s1388_s15 }
  0x98   :  { %v549_v63 = vsel %vm545_vm10, %v548_v61, 0.0  ;;  %v550_v0 = vsel %vm546_vm11, %v548_v61, 0.0  ;;  %v555_v1 = vsel %vm545_vm10, %v554_v62, 0.0  ;;  %v556_v4 = vsel %vm546_vm11, %v554_v62, 0.0 }
  0x99   :  { %v551_v7 = vadd.f32 %v549_v63, %v535_v57  ;;  %v552_v8 = vadd.f32 %v550_v0, %v536_v58  ;;  %v557_v10 = vadd.f32 %v555_v1, %v541_v59  ;;  %v558_v11 = vadd.f32 %v556_v4, %v542_v60 }
  0x9a   :  { %v560_v14 = vstv %s1390_s16  ;;  %v564_v15 = vstv %s1396_s17  ;;  %v570_v16 = vstv %s1398_s18  ;;  %v576_v17 = vstv %s1408_s19 }
  0x9b   :  { %vm561_vm12 = vcmp.ge.f32.partialorder %v967_v5, %v560_v14  ;;  %vm562_vm13 = vcmp.ge.f32.partialorder %v972_v6, %v560_v14  ;;  %vm1429_vm14 = vcmp.ge.f32.partialorder %v967_v5, %v576_v17  ;;  %vm1434_vm15 = vcmp.ge.f32.partialorder %v972_v6, %v576_v17 }
  0x9c   :  { %v565_v20 = vsel %vm561_vm12, %v564_v15, 0.0  ;;  %v566_v21 = vsel %vm562_vm13, %v564_v15, 0.0  ;;  %v571_v22 = vsel %vm561_vm12, %v570_v16, 0.0  ;;  %v572_v23 = vsel %vm562_vm13, %v570_v16, 0.0 }
  0x9d   :  { %v567_v24 = vadd.f32 %v565_v20, %v551_v7  ;;  %v568_v25 = vadd.f32 %v566_v21, %v552_v8  ;;  %v573_v26 = vadd.f32 %v571_v22, %v557_v10  ;;  %v574_v27 = vadd.f32 %v572_v23, %v558_v11 }
  0x9e   :  { %v580_v28 = vstv %s1414_s5  ;;  %v586_v5 = vstv %s1416_s20  ;;  %v621_v29 = vadd.s32 %v619_v12, %v960_v2  ;;  %vm624_vm0 = vcmp.lt.s32.totalorder %v989_v13, %v623_v9 }
  0x9f   :  { %v581_v6 = vsel %vm1429_vm14, %v580_v28, 0.0  ;;  %v582_v30 = vsel %vm1434_vm15, %v580_v28, 0.0  ;;  %v587_v31 = vsel %vm1429_vm14, %v586_v5, 0.0  ;;  %v588_v32 = vsel %vm1434_vm15, %v586_v5, 0.0 }
  0xa0   :  { %v583_v3 = vadd.f32 %v581_v6, %v567_v24  ;;  %v584_v2 = vadd.f32 %v582_v30, %v568_v25  ;;  %v589_v12 = vadd.f32 %v587_v31, %v573_v26  ;;  %v590_v33 = vadd.f32 %v588_v32, %v574_v27 }
  0xa1   :  { %vm625_vm1 = vcmp.lt.s32.totalorder %v621_v29, %v623_v9 }
  0xa2   :  { %591 = vst [vmem:[#allocation12] sm:$0xff] %v583_v3  ;;  %592 = vst [vmem:[#allocation12 + $0x8] sm:$0xff] %v584_v2  ;;  %v626_v13 = vsel %vm624_vm0, %v589_v12, 0.0  ;;  %v627_v34 = vsel %vm625_vm1, %v590_v33, 0.0 }
  0xa3   :  { %v628_v35 = vadd.f32 %v627_v34, %v626_v13 }
  0xa4   :  { %827 = shalt.err (!%p824_p6)
}
  0xa5   :  { %s828_s29 = scalar_lea.hbm %s1490_s6, 256 }
  0xa6   :  { %p829_p7 = scmp.ne.s32.totalorder %s1490_s6, %s828_s29  ;;  %p832_p8 = scmp.lt.u32.totalorder %s828_s29, %s1490_s6 }
  0xa8   :  { %p834_p9 = pnand %p832_p8, %p829_p7 }
  0xaa   :  { %837 = shalt.err (!%p834_p9)
}
  0xab   :  { %s877_s4 = smov 128   ;;  %s878_s1 = smov 8   ;;  %v629_v9 = vrot.slane %v628_v35, 4 }
  0xac   :  { %647 = dma.vmem_to_hbm [thread:$0]  %s642_s22, 256, %s1490_s6, [#allocation4], %s877_s4, %s877_s4, %s878_s1  }
  0xad   :  { %v630_v36 = vadd.f32 %v629_v9, %v628_v35  ;;  %s879_s11 = smov [#allocation13]  }
  0xae   :  { %s654_s12 = sshll.u32 %s879_s11, 4  ;;  %s655_s12 = int_to_ptr.vmem [resolvable:$true] %s654_s12 }
  0xaf   :  { %v631_v37 = vrot.slane %v630_v36, 2  ;;  %s838_s13 = scalar_lea.vmem %s655_s12, 16  ;;  %s842_s14 = scalar_lea.vmem %s655_s12, 32 }
  0xb0   :  { %p839_p10 = scmp.ne.s32.totalorder %s655_s12, %s838_s13  ;;  %p843_p11 = scmp.lt.s32.totalorder %s655_s12, %s655_s12 }
  0xb1   :  { %v632_v38 = vadd.f32 %v631_v37, %v630_v36  ;;  %p844_p12 = scmp.lt.s32.totalorder %s842_s14, %s838_s13 }
  0xb3   :  { %v633_v39 = vrot.slane %v632_v38, 1  ;;  %p845_p13 = por %p844_p12, %p843_p11 }
  0xb5   :  { %v634_v40 = vadd.f32 %v633_v39, %v632_v38  ;;  %p846_p0 = pnand %p845_p13, %p839_p10 }
  0xb7   :  { %635 = vst [vmem:[#allocation13] sm:$0x1] %v634_v40 }
  0xb8   :  { %849 = shalt.err (!%p846_p0)
}
  0xb9   :  { %s850_s16 = scalar_lea.hbm %s1491_s7, 16 }
  0xba   :  { %p851_p1 = scmp.ne.s32.totalorder %s1491_s7, %s850_s16  ;;  %p854_p2 = scmp.lt.u32.totalorder %s850_s16, %s1491_s7 }
  0xbc   :  { %p856_p3 = pnand %p854_p2, %p851_p1 }
  0xbe   :  { %859 = shalt.err (!%p856_p3)
}
  0xbf   :  { %657 = dma.vmem_to_hbm [thread:$0]  %s655_s12, 16, %s1491_s7, [#allocation14]  }
  0xc0   :  { %868 = dma.done.wait [#allocation4], 256  }
  0xc1   :  { %869 = vsyncadd [#allocation4], 4294967040 }
  0xc2   :  { %870 = dma.done.wait [#allocation14], 16  }
  0xc3   :  { %871 = vsyncadd [#allocation14], 4294967280 }
  0xc4   :  { %664 = vsyncpa [#allocation4], 1 }
  0xc5   :  { %665 = vsyncpa [#allocation14], 1 }
  0xc6   :  { %666 = vsyncpa [#allocation5], 1 }
  0xc7   :  { %667 = vsyncpa [#allocation11], 1 }
  0xc8   :  { %668 = vsyncpa [#allocation6], 1 }
  0xc9   :  { %669 = vsyncpa [#allocation8], 1 }

</bundles_post_ra>
